<compile_context>
chip_gen: v6e
topology: v6e:2x2x1
jax: 0.10.0
libtpu: 0.0.40
codegen_flags: <defaults>
</compile_context>

<pallas_src>
import functools

import jax
import jax.numpy as jnp
from jax.experimental import pallas as pl
from jax.experimental.pallas import tpu as pltpu

H1, H2, NUM_CLASSES = 100, 50, 10      # logical widths from the PyTorch module
H1P, H2P, NCP = 128, 128, 128          # lane-dense padded widths
EPS = 1e-5


# ---------------------------------------------------------------------------
# Pass 1: batch-global sum / sum-of-squares of x (stats for BatchNorm1d #1).
# Grid = (cores, steps); each core accumulates its own (1, d) partial.
# Padded zero rows contribute 0, so no masking is needed here.
# ---------------------------------------------------------------------------
def bn_stats_kernel(x_ref, sum_ref, ssq_ref):
    @pl.when(pl.program_id(1) == 0)
    def _init():
        sum_ref[...] = jnp.zeros_like(sum_ref)
        ssq_ref[...] = jnp.zeros_like(ssq_ref)

    x = x_ref[...]
    sum_ref[...] += jnp.sum(x, axis=0, keepdims=True)
    ssq_ref[...] += jnp.sum(x * x, axis=0, keepdims=True)


# ---------------------------------------------------------------------------
# Pass 2: fc1 (BN1 pre-folded into W1/b1) -> ReLU.
# Emits lane-dense bf16 h and accumulates per-core BN2 sum / sum-of-squares.
# ---------------------------------------------------------------------------
def fc1_kernel(x_ref, w1_ref, b1_ref, h_ref, hsum_ref, hssq_ref, *,
               valid_rows, tile_b, steps, need_mask):
    @pl.when(pl.program_id(1) == 0)
    def _init():
        hsum_ref[...] = jnp.zeros_like(hsum_ref)
        hssq_ref[...] = jnp.zeros_like(hssq_ref)

    h = jnp.dot(x_ref[...].astype(jnp.bfloat16), w1_ref[...],
                preferred_element_type=jnp.float32) + b1_ref[...]
    h = jnp.maximum(h, 0.0)                                   # ReLU, f32
    h_ref[...] = h.astype(jnp.bfloat16)                       # halve HBM stream

    if need_mask:
        # Exclude padded zero-input rows (which give ReLU(b1') != 0) from the
        # BN2 statistics. Only emitted when the batch was actually padded.
        base = (pl.program_id(0) * steps + pl.program_id(1)) * tile_b
        row = base + jax.lax.broadcasted_iota(jnp.int32, h.shape, 0)
        h = jnp.where(row < valid_rows, h, 0.0)
    hsum_ref[...] += jnp.sum(h, axis=0, keepdims=True)
    hssq_ref[...] += jnp.sum(h * h, axis=0, keepdims=True)


# ---------------------------------------------------------------------------
# Pass 3: fc2 (BN2 pre-folded) -> ReLU -> fc3 -> log_softmax.
# Padded logit lanes are masked via the fc3 bias (-1e30), so no in-kernel mask.
# ---------------------------------------------------------------------------
def head_kernel(h_ref, w2_ref, b2_ref, w3_ref, b3_ref, o_ref):
    a2 = jnp.dot(h_ref[...], w2_ref[...],
                 preferred_element_type=jnp.float32) + b2_ref[...]
    a2 = jnp.maximum(a2, 0.0)
    z = jnp.dot(a2.astype(jnp.bfloat16), w3_ref[...],
                preferred_element_type=jnp.float32) + b3_ref[...]
    zmax = jnp.max(z, axis=1, keepdims=True)
    zs = z - zmax
    lse = jnp.log(jnp.sum(jnp.exp(zs), axis=1, keepdims=True))
    o_ref[...] = zs - lse


# ---------------------------------------------------------------------------
# Host-side helpers (tiny (1, F) / (F, 128) ops only).
# ---------------------------------------------------------------------------
def _bn_scale_shift(s, ssq, n, gamma, beta):
    """Fold BatchNorm (training-mode batch stats) into per-feature scale/shift."""
    mean = s / n
    var = jnp.maximum(ssq / n - mean * mean, 0.0)             # biased variance
    scale = gamma * jax.lax.rsqrt(var + EPS)
    shift = beta - mean * scale
    return scale, shift


def _fold_affine_into_linear(scale, shift, w, b):
    """(x*scale+shift) @ W + b  ==  x @ (scale[:,None]*W) + (shift@W + b)."""
    w_folded = (w * scale.reshape(-1, 1)).astype(jnp.bfloat16)
    b_folded = shift @ w + b                                  # f32
    return w_folded, b_folded


def _round_up(x, m):
    return -(-x // m) * m


def _plan_batch(b):
    """Return (tile_b, num_cores, padded_batch).

    Small batches run as one whole-batch tile; larger batches use 512-row tiles
    (>= ~85% of HBM roofline) with a size-2 'parallel' core axis for v7x.
    Tile sizes are multiples of 16 (bf16 sublane packing of the h block).
    """
    if b <= 1024:
        t = _round_up(max(b, 16), 16)
        return t, 1, t
    t = 512
    nc = 2
    return t, nc, _round_up(b, nc * t)


# ---------------------------------------------------------------------------
# Forward.
# ---------------------------------------------------------------------------
def model_c_forward(x, params, *, return_padded=False):
    d = params["bn1_gamma"].shape[-1]
    x = x.reshape(-1, d).astype(jnp.float32)                  # x.view(-1, image_size)
    b = x.shape[0]

    tile_b, nc, b_pad = _plan_batch(b)
    steps = b_pad // (nc * tile_b)
    if b_pad != b:
        x = jnp.pad(x, ((0, b_pad - b), (0, 0)))              # zero rows (masked)

    sem12 = pltpu.CompilerParams(dimension_semantics=("parallel", "arbitrary"))

    # ---- pass 1: BN1 batch statistics (per-core partials) -------------------
    xsum, xssq = pl.pallas_call(
        bn_stats_kernel,
        grid=(nc, steps),
        in_specs=[pl.BlockSpec((tile_b, d), lambda c, i: (c * steps + i, 0))],
        out_specs=[pl.BlockSpec((None, 1, d), lambda c, i: (c, 0, 0)),
                   pl.BlockSpec((None, 1, d), lambda c, i: (c, 0, 0))],
        out_shape=[jax.ShapeDtypeStruct((nc, 1, d), jnp.float32),
                   jax.ShapeDtypeStruct((nc, 1, d), jnp.float32)],
        compiler_params=sem12,
    )(x)
    s1, t1 = _bn_scale_shift(jnp.sum(xsum, axis=0), jnp.sum(xssq, axis=0), b,
                             params["bn1_gamma"], params["bn1_beta"])
    w1f, b1f = _fold_affine_into_linear(s1, t1, params["fc1_w"], params["fc1_b"])

    # ---- pass 2: fc1 (BN1 folded) -> ReLU (+ BN2 statistics) ----------------
    h, hsum, hssq = pl.pallas_call(
        functools.partial(fc1_kernel, valid_rows=b, tile_b=tile_b,
                          steps=steps, need_mask=(b_pad != b)),
        grid=(nc, steps),
        in_specs=[
            pl.BlockSpec((tile_b, d), lambda c, i: (c * steps + i, 0)),   # x
            pl.BlockSpec((d, H1P), lambda c, i: (0, 0)),                  # W1' bf16
            pl.BlockSpec((1, H1P), lambda c, i: (0, 0)),                  # b1' f32
        ],
        out_specs=[
            pl.BlockSpec((tile_b, H1P), lambda c, i: (c * steps + i, 0)), # h bf16
            pl.BlockSpec((None, 1, H1P), lambda c, i: (c, 0, 0)),         # sum(h)
            pl.BlockSpec((None, 1, H1P), lambda c, i: (c, 0, 0)),         # sum(h*h)
        ],
        out_shape=[
            jax.ShapeDtypeStruct((b_pad, H1P), jnp.bfloat16),
            jax.ShapeDtypeStruct((nc, 1, H1P), jnp.float32),
            jax.ShapeDtypeStruct((nc, 1, H1P), jnp.float32),
        ],
        compiler_params=sem12,
    )(x, w1f, b1f)
    s2, t2 = _bn_scale_shift(jnp.sum(hsum, axis=0), jnp.sum(hssq, axis=0), b,
                             params["bn2_gamma"], params["bn2_beta"])
    w2f, b2f = _fold_affine_into_linear(s2, t2, params["fc2_w"], params["fc2_b"])
    w3_bf = params["fc3_w"].astype(jnp.bfloat16)

    # ---- pass 3: fc2 (BN2 folded) -> ReLU -> fc3 -> log_softmax -------------
    nbt = b_pad // tile_b
    out_padded = pl.pallas_call(
        head_kernel,
        grid=(nbt,),
        in_specs=[
            pl.BlockSpec((tile_b, H1P), lambda i: (i, 0)),    # h (bf16)
            pl.BlockSpec((H1P, H2P), lambda i: (0, 0)),       # W2' bf16
            pl.BlockSpec((1, H2P), lambda i: (0, 0)),         # b2' f32
            pl.BlockSpec((H2P, NCP), lambda i: (0, 0)),       # W3 bf16
            pl.BlockSpec((1, NCP), lambda i: (0, 0)),         # b3 (pad lanes -1e30)
        ],
        out_specs=pl.BlockSpec((tile_b, NCP), lambda i: (i, 0)),
        out_shape=jax.ShapeDtypeStruct((b_pad, NCP), jnp.float32),
        compiler_params=pltpu.CompilerParams(dimension_semantics=("parallel",)),
    )(h, w2f, b2f, w3_bf, params["fc3_b"])

    if return_padded:
        # Avoid the extra HBM copy: consumer indexes [:b, :NUM_CLASSES] itself.
        return out_padded
    return out_padded[:b, :NUM_CLASSES]


# ---------------------------------------------------------------------------
# Parameters (PyTorch-default-like init), f32 masters in padded kernel layout.
# ---------------------------------------------------------------------------
def init_params(image_size, key):
    ks = jax.random.split(key, 6)

    def linear(kw, kb, fan_in, fan_out, pad_in, pad_out):
        bound = 1.0 / (float(fan_in) ** 0.5)
        # stored as (in, out) = PyTorch weight.T, zero-padded to lane width
        w = jax.random.uniform(kw, (fan_in, fan_out), jnp.float32, -bound, bound)
        b = jax.random.uniform(kb, (fan_out,), jnp.float32, -bound, bound)
        w_p = jnp.zeros((pad_in, pad_out), jnp.float32).at[:fan_in, :fan_out].set(w)
        b_p = jnp.zeros((1, pad_out), jnp.float32).at[0, :fan_out].set(b)
        return w_p, b_p

    fc1_w, fc1_b = linear(ks[0], ks[1], image_size, H1, image_size, H1P)
    fc2_w, fc2_b = linear(ks[2], ks[3], H1, H2, H1P, H2P)
    fc3_w, fc3_b = linear(ks[4], ks[5], H2, NUM_CLASSES, H2P, NCP)
    # Padded W3 output columns are zero, so z_pad == -1e30 exactly: the
    # log-softmax padding mask is baked into the bias (no in-kernel mask ops).
    fc3_b = fc3_b.at[0, NUM_CLASSES:].set(-1e30)

    return {
        "bn1_gamma": jnp.ones((1, image_size), jnp.float32),
        "bn1_beta": jnp.zeros((1, image_size), jnp.float32),
        "fc1_w": fc1_w, "fc1_b": fc1_b,
        # padded BN2 features get gamma=0, beta=0 so they stay exactly zero
        "bn2_gamma": jnp.zeros((1, H1P), jnp.float32).at[0, :H1].set(1.0),
        "bn2_beta": jnp.zeros((1, H1P), jnp.float32),
        "fc2_w": fc2_w, "fc2_b": fc2_b,
        "fc3_w": fc3_w, "fc3_b": fc3_b,
    }


# ---------------------------------------------------------------------------
# Pure-JAX reference mirroring the kernel math (for correctness check).
# ---------------------------------------------------------------------------
def model_c_reference(x, params):
    d = params["bn1_gamma"].shape[-1]
    x = x.reshape(-1, d).astype(jnp.float32)
    n = x.shape[0]

    s1, t1 = _bn_scale_shift(jnp.sum(x, 0, keepdims=True),
                             jnp.sum(x * x, 0, keepdims=True), n,
                             params["bn1_gamma"], params["bn1_beta"])
    w1f, b1f = _fold_affine_into_linear(s1, t1, params["fc1_w"], params["fc1_b"])
    h = jnp.maximum(jnp.dot(x.astype(jnp.bfloat16), w1f,
                            preferred_element_type=jnp.float32) + b1f, 0.0)
    h_bf = h.astype(jnp.bfloat16)

    s2, t2 = _bn_scale_shift(jnp.sum(h, 0, keepdims=True),
                             jnp.sum(h * h, 0, keepdims=True), n,
                             params["bn2_gamma"], params["bn2_beta"])
    w2f, b2f = _fold_affine_into_linear(s2, t2, params["fc2_w"], params["fc2_b"])
    a2 = jnp.maximum(jnp.dot(h_bf, w2f,
                             preferred_element_type=jnp.float32) + b2f, 0.0)
    z = jnp.dot(a2.astype(jnp.bfloat16), params["fc3_w"].astype(jnp.bfloat16),
                preferred_element_type=jnp.float32) + params["fc3_b"]
    z = z[:, :NUM_CLASSES]
    return jax.nn.log_softmax(z, axis=1)


if __name__ == "__main__":
    image_size = 32

    key = jax.random.PRNGKey(0)
    k_x1, k_x2, k_p = jax.random.split(key, 3)
    params = init_params(image_size, k_p)
    fwd = jax.jit(model_c_forward)

    # Case 1: small batch, single whole-batch tile, no padding.
    x1 = jax.random.normal(k_x1, (256, image_size), jnp.float32)
    out1 = jax.block_until_ready(fwd(x1, params))
    assert out1.shape == (256, NUM_CLASSES)
    assert bool(jnp.all(jnp.isfinite(out1)))
    assert jnp.allclose(jnp.sum(jnp.exp(out1), axis=1), 1.0, atol=1e-4)
    ref1 = model_c_reference(x1, params)
    err1 = float(jnp.max(jnp.abs(out1 - ref1)))
    assert jnp.allclose(out1, ref1, atol=3e-3, rtol=3e-3), err1

    # Case 2: awkward batch -> exercises padding, the BN-stat row mask and the
    # 2-core 'parallel' grid for passes 1-2.
    x2 = jax.random.normal(k_x2, (1500, image_size), jnp.float32)
    out2 = jax.block_until_ready(fwd(x2, params))
    assert out2.shape == (1500, NUM_CLASSES)
    assert bool(jnp.all(jnp.isfinite(out2)))
    assert jnp.allclose(jnp.sum(jnp.exp(out2), axis=1), 1.0, atol=1e-4)
    ref2 = model_c_reference(x2, params)
    err2 = float(jnp.max(jnp.abs(out2 - ref2)))
    assert jnp.allclose(out2, ref2, atol=3e-3, rtol=3e-3), err2

    print("KERNEL_OK")
</pallas_src>

<mosaic_0001>
module attributes {stable_mosaic.version = 11 : i64} {
  func.func @bn_stats_kernel(%arg0: i32, %arg1: i32, %arg2: memref<256x32xf32, #tpu.memory_space<vmem>>, %arg3: memref<1x1x32xf32, #tpu.memory_space<vmem>>, %arg4: memref<1x1x32xf32, #tpu.memory_space<vmem>>) attributes {dimension_semantics = [#tpu.dimension_semantics<parallel>, #tpu.dimension_semantics<arbitrary>], iteration_bounds = array<i64: 1, 1>, scalar_prefetch = 0 : i64, scratch_operands = 0 : i64, tpu.core_type = #tpu.core_type<tc>, window_params = [{transform_indices = @transform_0, window_bounds = array<i64: 256, 32>}, {transform_indices = @transform_1, window_bounds = array<i64: 1, 1, 32>}, {transform_indices = @transform_2, window_bounds = array<i64: 1, 1, 32>}]} {
    %c0_i32 = arith.constant 0 : i32
    %0 = arith.cmpi eq, %arg1, %c0_i32 : i32
    %1 = arith.extui %0 : i1 to i32
    %c0_i32_0 = arith.constant 0 : i32
    %2 = arith.cmpi ne, %1, %c0_i32_0 : i32
    scf.if %2 {
      %cst_15 = arith.constant 0.000000e+00 : f32
      %21 = vector.broadcast %cst_15 : f32 to vector<1x32xf32>
      %c0_16 = arith.constant 0 : index
      %c0_17 = arith.constant 0 : index
      %c0_18 = arith.constant 0 : index
      %22 = vector.load %arg3[%c0_16, %c0_17, %c0_18] : memref<1x1x32xf32, #tpu.memory_space<vmem>>, vector<1x1x32xf32>
      %23 = vector.shape_cast %22 : vector<1x1x32xf32> to vector<1x32xf32>
      %24 = vector.shape_cast %21 : vector<1x32xf32> to vector<1x1x32xf32>
      tpu.vector_store %arg3[%c0_16, %c0_17, %c0_18], %24 {strides = array<i32>} : memref<1x1x32xf32, #tpu.memory_space<vmem>>, vector<1x1x32xf32>,
      %cst_19 = arith.constant 0.000000e+00 : f32
      %25 = vector.broadcast %cst_19 : f32 to vector<1x32xf32>
      %c0_20 = arith.constant 0 : index
      %c0_21 = arith.constant 0 : index
      %c0_22 = arith.constant 0 : index
      %26 = vector.load %arg4[%c0_20, %c0_21, %c0_22] : memref<1x1x32xf32, #tpu.memory_space<vmem>>, vector<1x1x32xf32>
      %27 = vector.shape_cast %26 : vector<1x1x32xf32> to vector<1x32xf32>
      %28 = vector.shape_cast %25 : vector<1x32xf32> to vector<1x1x32xf32>
      tpu.vector_store %arg4[%c0_20, %c0_21, %c0_22], %28 {strides = array<i32>} : memref<1x1x32xf32, #tpu.memory_space<vmem>>, vector<1x1x32xf32>,
    } else {
    }
    %c0 = arith.constant 0 : index
    %c0_1 = arith.constant 0 : index
    %3 = vector.load %arg2[%c0, %c0_1] : memref<256x32xf32, #tpu.memory_space<vmem>>, vector<256x32xf32>
    %c0_2 = arith.constant 0 : index
    %c0_3 = arith.constant 0 : index
    %c0_4 = arith.constant 0 : index
    %4 = vector.load %arg3[%c0_2, %c0_3, %c0_4] : memref<1x1x32xf32, #tpu.memory_space<vmem>>, vector<1x1x32xf32>
    %5 = vector.shape_cast %4 : vector<1x1x32xf32> to vector<1x32xf32>
    %cst = arith.constant dense<0.000000e+00> : vector<32xf32>
    %6 = vector.multi_reduction <add>, %3, %cst [0] : vector<256x32xf32> to vector<32xf32>
    %7 = vector.shape_cast %6 : vector<32xf32> to vector<1x32xf32>
    %8 = arith.addf %5, %7 : vector<1x32xf32>
    %c0_5 = arith.constant 0 : index
    %c0_6 = arith.constant 0 : index
    %c0_7 = arith.constant 0 : index
    %9 = vector.load %arg3[%c0_5, %c0_6, %c0_7] : memref<1x1x32xf32, #tpu.memory_space<vmem>>, vector<1x1x32xf32>
    %10 = vector.shape_cast %9 : vector<1x1x32xf32> to vector<1x32xf32>
    %11 = vector.shape_cast %8 : vector<1x32xf32> to vector<1x1x32xf32>
    tpu.vector_store %arg3[%c0_5, %c0_6, %c0_7], %11 {strides = array<i32>} : memref<1x1x32xf32, #tpu.memory_space<vmem>>, vector<1x1x32xf32>,
    %c0_8 = arith.constant 0 : index
    %c0_9 = arith.constant 0 : index
    %c0_10 = arith.constant 0 : index
    %12 = vector.load %arg4[%c0_8, %c0_9, %c0_10] : memref<1x1x32xf32, #tpu.memory_space<vmem>>, vector<1x1x32xf32>
    %13 = vector.shape_cast %12 : vector<1x1x32xf32> to vector<1x32xf32>
    %14 = arith.mulf %3, %3 : vector<256x32xf32>
    %cst_11 = arith.constant dense<0.000000e+00> : vector<32xf32>
    %15 = vector.multi_reduction <add>, %14, %cst_11 [0] : vector<256x32xf32> to vector<32xf32>
    %16 = vector.shape_cast %15 : vector<32xf32> to vector<1x32xf32>
    %17 = arith.addf %13, %16 : vector<1x32xf32>
    %c0_12 = arith.constant 0 : index
    %c0_13 = arith.constant 0 : index
    %c0_14 = arith.constant 0 : index
    %18 = vector.load %arg4[%c0_12, %c0_13, %c0_14] : memref<1x1x32xf32, #tpu.memory_space<vmem>>, vector<1x1x32xf32>
    %19 = vector.shape_cast %18 : vector<1x1x32xf32> to vector<1x32xf32>
    %20 = vector.shape_cast %17 : vector<1x32xf32> to vector<1x1x32xf32>
    tpu.vector_store %arg4[%c0_12, %c0_13, %c0_14], %20 {strides = array<i32>} : memref<1x1x32xf32, #tpu.memory_space<vmem>>, vector<1x1x32xf32>,
    return
  }
  func.func @transform_0(%arg0: i32, %arg1: i32) -> (i32, i32) {
    %c1_i32 = arith.constant 1 : i32
    %0 = arith.muli %arg0, %c1_i32 : i32
    %1 = arith.addi %0, %arg1 : i32
    %c0_i32 = arith.constant 0 : i32
    %c0_i32_0 = arith.constant 0 : i32
    return %1, %c0_i32 : i32, i32
  }
  func.func @transform_1(%arg0: i32, %arg1: i32) -> (i32, i32, i32) {
    %c0_i32 = arith.constant 0 : i32
    %c0_i32_0 = arith.constant 0 : i32
    %c0_i32_1 = arith.constant 0 : i32
    return %arg0, %c0_i32, %c0_i32_0 : i32, i32, i32
  }
  func.func @transform_2(%arg0: i32, %arg1: i32) -> (i32, i32, i32) {
    %c0_i32 = arith.constant 0 : i32
    %c0_i32_0 = arith.constant 0 : i32
    %c0_i32_1 = arith.constant 0 : i32
    return %arg0, %c0_i32, %c0_i32_0 : i32, i32, i32
  }
}

module attributes {stable_mosaic.version = 11 : i64} {
  func.func @fc1_kernel(%arg0: i32, %arg1: i32, %arg2: memref<256x32xf32, #tpu.memory_space<vmem>>, %arg3: memref<32x128xbf16, #tpu.memory_space<vmem>>, %arg4: memref<1x128xf32, #tpu.memory_space<vmem>>, %arg5: memref<256x128xbf16, #tpu.memory_space<vmem>>, %arg6: memref<1x1x128xf32, #tpu.memory_space<vmem>>, %arg7: memref<1x1x128xf32, #tpu.memory_space<vmem>>) attributes {dimension_semantics = [#tpu.dimension_semantics<parallel>, #tpu.dimension_semantics<arbitrary>], iteration_bounds = array<i64: 1, 1>, scalar_prefetch = 0 : i64, scratch_operands = 0 : i64, tpu.core_type = #tpu.core_type<tc>, window_params = [{transform_indices = @transform_0, window_bounds = array<i64: 256, 32>}, {pipeline_mode = #tpu.pipeline_mode<synchronous>, transform_indices = @transform_1, window_bounds = array<i64: 32, 128>}, {pipeline_mode = #tpu.pipeline_mode<synchronous>, transform_indices = @transform_2, window_bounds = array<i64: 1, 128>}, {transform_indices = @transform_3, window_bounds = array<i64: 256, 128>}, {transform_indices = @transform_4, window_bounds = array<i64: 1, 1, 128>}, {transform_indices = @transform_5, window_bounds = array<i64: 1, 1, 128>}]} {
    %c0_i32 = arith.constant 0 : i32
    %0 = arith.cmpi eq, %arg1, %c0_i32 : i32
    %1 = arith.extui %0 : i1 to i32
    %c0_i32_0 = arith.constant 0 : i32
    %2 = arith.cmpi ne, %1, %c0_i32_0 : i32
    scf.if %2 {
      %cst_23 = arith.constant 0.000000e+00 : f32
      %31 = vector.broadcast %cst_23 : f32 to vector<1x128xf32>
      %c0_24 = arith.constant 0 : index
      %c0_25 = arith.constant 0 : index
      %c0_26 = arith.constant 0 : index
      %32 = vector.load %arg6[%c0_24, %c0_25, %c0_26] : memref<1x1x128xf32, #tpu.memory_space<vmem>>, vector<1x1x128xf32>
      %33 = vector.shape_cast %32 : vector<1x1x128xf32> to vector<1x128xf32>
      %34 = vector.shape_cast %31 : vector<1x128xf32> to vector<1x1x128xf32>
      tpu.vector_store %arg6[%c0_24, %c0_25, %c0_26], %34 {strides = array<i32>} : memref<1x1x128xf32, #tpu.memory_space<vmem>>, vector<1x1x128xf32>,
      %cst_27 = arith.constant 0.000000e+00 : f32
      %35 = vector.broadcast %cst_27 : f32 to vector<1x128xf32>
      %c0_28 = arith.constant 0 : index
      %c0_29 = arith.constant 0 : index
      %c0_30 = arith.constant 0 : index
      %36 = vector.load %arg7[%c0_28, %c0_29, %c0_30] : memref<1x1x128xf32, #tpu.memory_space<vmem>>, vector<1x1x128xf32>
      %37 = vector.shape_cast %36 : vector<1x1x128xf32> to vector<1x128xf32>
      %38 = vector.shape_cast %35 : vector<1x128xf32> to vector<1x1x128xf32>
      tpu.vector_store %arg7[%c0_28, %c0_29, %c0_30], %38 {strides = array<i32>} : memref<1x1x128xf32, #tpu.memory_space<vmem>>, vector<1x1x128xf32>,
    } else {
    }
    %c0 = arith.constant 0 : index
    %c0_1 = arith.constant 0 : index
    %3 = vector.load %arg2[%c0, %c0_1] : memref<256x32xf32, #tpu.memory_space<vmem>>, vector<256x32xf32>
    %4 = arith.truncf %3 : vector<256x32xf32> to vector<256x32xbf16>
    %c0_2 = arith.constant 0 : index
    %c0_3 = arith.constant 0 : index
    %5 = vector.load %arg3[%c0_2, %c0_3] : memref<32x128xbf16, #tpu.memory_space<vmem>>, vector<32x128xbf16>
    %cst = arith.constant dense<0.000000e+00> : vector<256x128xf32>
    %6 = tpu.matmul %4, %5, %cst {dimension_numbers = #tpu.dot_dimension_numbers<[1], [0], [0], [1], [0, 0, 1, 1], [], []>} : vector<256x32xbf16>, vector<32x128xbf16>, vector<256x128xf32> -> vector<256x128xf32>
    %c0_4 = arith.constant 0 : index
    %c0_5 = arith.constant 0 : index
    %7 = vector.load %arg4[%c0_4, %c0_5] : memref<1x128xf32, #tpu.memory_space<vmem>>, vector<1x128xf32>
    %8 = vector.broadcast %7 : vector<1x128xf32> to vector<256x128xf32>
    %9 = arith.addf %6, %8 : vector<256x128xf32>
    %cst_6 = arith.constant 0.000000e+00 : f32
    %10 = vector.broadcast %cst_6 : f32 to vector<256x128xf32>
    %11 = arith.maximumf %9, %10 : vector<256x128xf32>
    %12 = arith.truncf %11 : vector<256x128xf32> to vector<256x128xbf16>
    %c0_7 = arith.constant 0 : index
    %c0_8 = arith.constant 0 : index
    %13 = vector.load %arg5[%c0_7, %c0_8] : memref<256x128xbf16, #tpu.memory_space<vmem>>, vector<256x128xbf16>
    tpu.vector_store %arg5[%c0_7, %c0_8], %12 {strides = array<i32>} : memref<256x128xbf16, #tpu.memory_space<vmem>>, vector<256x128xbf16>,
    %c0_9 = arith.constant 0 : index
    %c0_10 = arith.constant 0 : index
    %c0_11 = arith.constant 0 : index
    %14 = vector.load %arg6[%c0_9, %c0_10, %c0_11] : memref<1x1x128xf32, #tpu.memory_space<vmem>>, vector<1x1x128xf32>
    %15 = vector.shape_cast %14 : vector<1x1x128xf32> to vector<1x128xf32>
    %cst_12 = arith.constant dense<0.000000e+00> : vector<128xf32>
    %16 = vector.multi_reduction <add>, %11, %cst_12 [0] : vector<256x128xf32> to vector<128xf32>
    %17 = vector.shape_cast %16 : vector<128xf32> to vector<1x128xf32>
    %18 = arith.addf %15, %17 : vector<1x128xf32>
    %c0_13 = arith.constant 0 : index
    %c0_14 = arith.constant 0 : index
    %c0_15 = arith.constant 0 : index
    %19 = vector.load %arg6[%c0_13, %c0_14, %c0_15] : memref<1x1x128xf32, #tpu.memory_space<vmem>>, vector<1x1x128xf32>
    %20 = vector.shape_cast %19 : vector<1x1x128xf32> to vector<1x128xf32>
    %21 = vector.shape_cast %18 : vector<1x128xf32> to vector<1x1x128xf32>
    tpu.vector_store %arg6[%c0_13, %c0_14, %c0_15], %21 {strides = array<i32>} : memref<1x1x128xf32, #tpu.memory_space<vmem>>, vector<1x1x128xf32>,
    %c0_16 = arith.constant 0 : index
    %c0_17 = arith.constant 0 : index
    %c0_18 = arith.constant 0 : index
    %22 = vector.load %arg7[%c0_16, %c0_17, %c0_18] : memref<1x1x128xf32, #tpu.memory_space<vmem>>, vector<1x1x128xf32>
    %23 = vector.shape_cast %22 : vector<1x1x128xf32> to vector<1x128xf32>
    %24 = arith.mulf %11, %11 : vector<256x128xf32>
    %cst_19 = arith.constant dense<0.000000e+00> : vector<128xf32>
    %25 = vector.multi_reduction <add>, %24, %cst_19 [0] : vector<256x128xf32> to vector<128xf32>
    %26 = vector.shape_cast %25 : vector<128xf32> to vector<1x128xf32>
    %27 = arith.addf %23, %26 : vector<1x128xf32>
    %c0_20 = arith.constant 0 : index
    %c0_21 = arith.constant 0 : index
    %c0_22 = arith.constant 0 : index
    %28 = vector.load %arg7[%c0_20, %c0_21, %c0_22] : memref<1x1x128xf32, #tpu.memory_space<vmem>>, vector<1x1x128xf32>
    %29 = vector.shape_cast %28 : vector<1x1x128xf32> to vector<1x128xf32>
    %30 = vector.shape_cast %27 : vector<1x128xf32> to vector<1x1x128xf32>
    tpu.vector_store %arg7[%c0_20, %c0_21, %c0_22], %30 {strides = array<i32>} : memref<1x1x128xf32, #tpu.memory_space<vmem>>, vector<1x1x128xf32>,
    return
  }
  func.func @transform_0(%arg0: i32, %arg1: i32) -> (i32, i32) {
    %c1_i32 = arith.constant 1 : i32
    %0 = arith.muli %arg0, %c1_i32 : i32
    %1 = arith.addi %0, %arg1 : i32
    %c0_i32 = arith.constant 0 : i32
    %c0_i32_0 = arith.constant 0 : i32
    return %1, %c0_i32 : i32, i32
  }
  func.func @transform_1(%arg0: i32, %arg1: i32) -> (i32, i32) {
    %c0_i32 = arith.constant 0 : i32
    %c0_i32_0 = arith.constant 0 : i32
    %c0_i32_1 = arith.constant 0 : i32
    return %c0_i32, %c0_i32_0 : i32, i32
  }
  func.func @transform_2(%arg0: i32, %arg1: i32) -> (i32, i32) {
    %c0_i32 = arith.constant 0 : i32
    %c0_i32_0 = arith.constant 0 : i32
    %c0_i32_1 = arith.constant 0 : i32
    return %c0_i32, %c0_i32_0 : i32, i32
  }
  func.func @transform_3(%arg0: i32, %arg1: i32) -> (i32, i32) {
    %c1_i32 = arith.constant 1 : i32
    %0 = arith.muli %arg0, %c1_i32 : i32
    %1 = arith.addi %0, %arg1 : i32
    %c0_i32 = arith.constant 0 : i32
    %c0_i32_0 = arith.constant 0 : i32
    return %1, %c0_i32 : i32, i32
  }
  func.func @transform_4(%arg0: i32, %arg1: i32) -> (i32, i32, i32) {
    %c0_i32 = arith.constant 0 : i32
    %c0_i32_0 = arith.constant 0 : i32
    %c0_i32_1 = arith.constant 0 : i32
    return %arg0, %c0_i32, %c0_i32_0 : i32, i32, i32
  }
  func.func @transform_5(%arg0: i32, %arg1: i32) -> (i32, i32, i32) {
    %c0_i32 = arith.constant 0 : i32
    %c0_i32_0 = arith.constant 0 : i32
    %c0_i32_1 = arith.constant 0 : i32
    return %arg0, %c0_i32, %c0_i32_0 : i32, i32, i32
  }
}

module attributes {stable_mosaic.version = 11 : i64} {
  func.func @head_kernel(%arg0: i32, %arg1: memref<256x128xbf16, #tpu.memory_space<vmem>>, %arg2: memref<128x128xbf16, #tpu.memory_space<vmem>>, %arg3: memref<1x128xf32, #tpu.memory_space<vmem>>, %arg4: memref<128x128xbf16, #tpu.memory_space<vmem>>, %arg5: memref<1x128xf32, #tpu.memory_space<vmem>>, %arg6: memref<256x128xf32, #tpu.memory_space<vmem>>) attributes {dimension_semantics = [#tpu.dimension_semantics<parallel>], iteration_bounds = array<i64: 1>, scalar_prefetch = 0 : i64, scratch_operands = 0 : i64, tpu.core_type = #tpu.core_type<tc>, window_params = [{transform_indices = @transform_0, window_bounds = array<i64: 256, 128>}, {pipeline_mode = #tpu.pipeline_mode<synchronous>, transform_indices = @transform_1, window_bounds = array<i64: 128, 128>}, {pipeline_mode = #tpu.pipeline_mode<synchronous>, transform_indices = @transform_2, window_bounds = array<i64: 1, 128>}, {pipeline_mode = #tpu.pipeline_mode<synchronous>, transform_indices = @transform_3, window_bounds = array<i64: 128, 128>}, {pipeline_mode = #tpu.pipeline_mode<synchronous>, transform_indices = @transform_4, window_bounds = array<i64: 1, 128>}, {transform_indices = @transform_5, window_bounds = array<i64: 256, 128>}]} {
    %c0 = arith.constant 0 : index
    %c0_0 = arith.constant 0 : index
    %0 = vector.load %arg1[%c0, %c0_0] : memref<256x128xbf16, #tpu.memory_space<vmem>>, vector<256x128xbf16>
    %c0_1 = arith.constant 0 : index
    %c0_2 = arith.constant 0 : index
    %1 = vector.load %arg2[%c0_1, %c0_2] : memref<128x128xbf16, #tpu.memory_space<vmem>>, vector<128x128xbf16>
    %cst = arith.constant dense<0.000000e+00> : vector<256x128xf32>
    %2 = tpu.matmul %0, %1, %cst {dimension_numbers = #tpu.dot_dimension_numbers<[1], [0], [0], [1], [0, 0, 1, 1], [], []>} : vector<256x128xbf16>, vector<128x128xbf16>, vector<256x128xf32> -> vector<256x128xf32>
    %c0_3 = arith.constant 0 : index
    %c0_4 = arith.constant 0 : index
    %3 = vector.load %arg3[%c0_3, %c0_4] : memref<1x128xf32, #tpu.memory_space<vmem>>, vector<1x128xf32>
    %4 = vector.broadcast %3 : vector<1x128xf32> to vector<256x128xf32>
    %5 = arith.addf %2, %4 : vector<256x128xf32>
    %cst_5 = arith.constant 0.000000e+00 : f32
    %6 = vector.broadcast %cst_5 : f32 to vector<256x128xf32>
    %7 = arith.maximumf %5, %6 : vector<256x128xf32>
    %8 = arith.truncf %7 : vector<256x128xf32> to vector<256x128xbf16>
    %c0_6 = arith.constant 0 : index
    %c0_7 = arith.constant 0 : index
    %9 = vector.load %arg4[%c0_6, %c0_7] : memref<128x128xbf16, #tpu.memory_space<vmem>>, vector<128x128xbf16>
    %cst_8 = arith.constant dense<0.000000e+00> : vector<256x128xf32>
    %10 = tpu.matmul %8, %9, %cst_8 {dimension_numbers = #tpu.dot_dimension_numbers<[1], [0], [0], [1], [0, 0, 1, 1], [], []>} : vector<256x128xbf16>, vector<128x128xbf16>, vector<256x128xf32> -> vector<256x128xf32>
    %c0_9 = arith.constant 0 : index
    %c0_10 = arith.constant 0 : index
    %11 = vector.load %arg5[%c0_9, %c0_10] : memref<1x128xf32, #tpu.memory_space<vmem>>, vector<1x128xf32>
    %12 = vector.broadcast %11 : vector<1x128xf32> to vector<256x128xf32>
    %13 = arith.addf %10, %12 : vector<256x128xf32>
    %cst_11 = arith.constant dense<0xFF800000> : vector<256xf32>
    %14 = vector.multi_reduction <maximumf>, %13, %cst_11 [1] : vector<256x128xf32> to vector<256xf32>
    %15 = vector.shape_cast %14 : vector<256xf32> to vector<256x1xf32>
    %16 = vector.broadcast %15 : vector<256x1xf32> to vector<256x128xf32>
    %17 = arith.subf %13, %16 : vector<256x128xf32>
    %18 = math.exp %17 : vector<256x128xf32>
    %cst_12 = arith.constant dense<0.000000e+00> : vector<256xf32>
    %19 = vector.multi_reduction <add>, %18, %cst_12 [1] : vector<256x128xf32> to vector<256xf32>
    %20 = vector.shape_cast %19 : vector<256xf32> to vector<256x1xf32>
    %21 = math.log %20 : vector<256x1xf32>
    %22 = vector.broadcast %21 : vector<256x1xf32> to vector<256x128xf32>
    %23 = arith.subf %17, %22 : vector<256x128xf32>
    %c0_13 = arith.constant 0 : index
    %c0_14 = arith.constant 0 : index
    %24 = vector.load %arg6[%c0_13, %c0_14] : memref<256x128xf32, #tpu.memory_space<vmem>>, vector<256x128xf32>
    tpu.vector_store %arg6[%c0_13, %c0_14], %23 {strides = array<i32>} : memref<256x128xf32, #tpu.memory_space<vmem>>, vector<256x128xf32>,
    return
  }
  func.func @transform_0(%arg0: i32) -> (i32, i32) {
    %c0_i32 = arith.constant 0 : i32
    %c0_i32_0 = arith.constant 0 : i32
    return %arg0, %c0_i32 : i32, i32
  }
  func.func @transform_1(%arg0: i32) -> (i32, i32) {
    %c0_i32 = arith.constant 0 : i32
    %c0_i32_0 = arith.constant 0 : i32
    %c0_i32_1 = arith.constant 0 : i32
    return %c0_i32, %c0_i32_0 : i32, i32
  }
  func.func @transform_2(%arg0: i32) -> (i32, i32) {
    %c0_i32 = arith.constant 0 : i32
    %c0_i32_0 = arith.constant 0 : i32
    %c0_i32_1 = arith.constant 0 : i32
    return %c0_i32, %c0_i32_0 : i32, i32
  }
  func.func @transform_3(%arg0: i32) -> (i32, i32) {
    %c0_i32 = arith.constant 0 : i32
    %c0_i32_0 = arith.constant 0 : i32
    %c0_i32_1 = arith.constant 0 : i32
    return %c0_i32, %c0_i32_0 : i32, i32
  }
  func.func @transform_4(%arg0: i32) -> (i32, i32) {
    %c0_i32 = arith.constant 0 : i32
    %c0_i32_0 = arith.constant 0 : i32
    %c0_i32_1 = arith.constant 0 : i32
    return %c0_i32, %c0_i32_0 : i32, i32
  }
  func.func @transform_5(%arg0: i32) -> (i32, i32) {
    %c0_i32 = arith.constant 0 : i32
    %c0_i32_0 = arith.constant 0 : i32
    return %arg0, %c0_i32 : i32, i32
  }
}

</mosaic_0001>

<bundles_post_ra>
// kernel: model_c_forward.3
= control target key start
LH: loop header
LB: loop body
LE: loop exit
PB: predicated region body
PF: predicated region fallthrough
CT: control target
= control target key end

     0   :  { %vm36_vm0 = vcmask 253952   ;;  %vm72_vm1 = vcmask 261120   ;;  %v264_v0 = vmov 0.0   ;;  %s462_s0 = inlined_call_operand.vmem [shape: f32[256,32], index: 0, kind: input, shape index: {}]   ;;  %s463_s1 = inlined_call_operand.vmem [shape: f32[1,1,32], index: 1, kind: output, shape index: {0}]   ;;  %s464_s2 = inlined_call_operand.vmem [shape: f32[1,1,32], index: 2, kind: output, shape index: {1}]  }
   0x1   :  { %37 = vst.msk [vmem:[%s463_s1] sm:$0x1] %vm36_vm0, %v264_v0  ;;  %v39_v1 = vld [vmem:[%s462_s0] sm:$0xff]  ;;  %v40_v2 = vld [vmem:[%s462_s0 + $0x8] sm:$0xff]  ;;  %v41_v3 = vld [vmem:[%s462_s0 + $0x10] sm:$0xff] }
   0x2   :  { %38 = vst.msk [vmem:[%s464_s2] sm:$0x1] %vm36_vm0, %v264_v0  ;;  %v73_v4 = vsel %vm72_vm1, %v39_v1, 0.0  ;;  %v74_v5 = vsel %vm72_vm1, %v40_v2, 0.0  ;;  %v76_v6 = vsel %vm72_vm1, %v41_v3, 0.0  ;;  %v42_v7 = vld [vmem:[%s462_s0 + $0x18] sm:$0xff]  ;;  %v146_v28 = vmul.f32 %v39_v1, %v39_v1 }
   0x3   :  { %v75_v8 = vadd.f32 %v74_v5, %v73_v4  ;;  %v78_v9 = vsel %vm72_vm1, %v42_v7, 0.0  ;;  %v43_v10 = vld [vmem:[%s462_s0 + $0x20] sm:$0xff]  ;;  %v44_v13 = vld [vmem:[%s462_s0 + $0x28] sm:$0xff]  ;;  %v45_v16 = vld [vmem:[%s462_s0 + $0x30] sm:$0xff]  ;;  %v147_v29 = vmul.f32 %v40_v2, %v40_v2  ;;  %v148_v30 = vmul.f32 %v41_v3, %v41_v3 }
   0x4   :  { %v80_v12 = vsel %vm72_vm1, %v43_v10, 0.0  ;;  %v82_v15 = vsel %vm72_vm1, %v44_v13, 0.0  ;;  %v84_v18 = vsel %vm72_vm1, %v45_v16, 0.0  ;;  %v46_v19 = vld [vmem:[%s462_s0 + $0x38] sm:$0xff]  ;;  %v47_v22 = vld [vmem:[%s462_s0 + $0x40] sm:$0xff]  ;;  %v48_v25 = vld [vmem:[%s462_s0 + $0x48] sm:$0xff]  ;;  %v149_v35 = vmul.f32 %v42_v7, %v42_v7 }
   0x5   :  { %v77_v11 = vadd.f32 %v76_v6, %v75_v8  ;;  %v86_v21 = vsel %vm72_vm1, %v46_v19, 0.0  ;;  %v88_v24 = vsel %vm72_vm1, %v47_v22, 0.0  ;;  %v90_v27 = vsel %vm72_vm1, %v48_v25, 0.0  ;;  %v49_v31 = vld [vmem:[%s462_s0 + $0x50] sm:$0xff]  ;;  %v50_v33 = vld [vmem:[%s462_s0 + $0x58] sm:$0xff]  ;;  %v51_v42 = vld [vmem:[%s462_s0 + $0x60] sm:$0xff] }
   0x6   :  { %v92_v34 = vsel %vm72_vm1, %v49_v31, 0.0  ;;  %v94_v37 = vsel %vm72_vm1, %v50_v33, 0.0  ;;  %v150_v38 = vmul.f32 %v43_v10, %v43_v10  ;;  %v178_v39 = vsel %vm72_vm1, %v146_v28, 0.0  ;;  %v52_v48 = vld [vmem:[%s462_s0 + $0x68] sm:$0xff]  ;;  %v53_v54 = vld [vmem:[%s462_s0 + $0x70] sm:$0xff]  ;;  %v54_v60 = vld [vmem:[%s462_s0 + $0x78] sm:$0xff] }
   0x7   :  { %v79_v14 = vadd.f32 %v78_v9, %v77_v11  ;;  %v179_v40 = vsel %vm72_vm1, %v147_v29, 0.0  ;;  %v181_v41 = vsel %vm72_vm1, %v148_v30, 0.0  ;;  %v96_v45 = vsel %vm72_vm1, %v51_v42, 0.0  ;;  %v55_v2 = vld [vmem:[%s462_s0 + $0x80] sm:$0xff]  ;;  %v56_v8 = vld [vmem:[%s462_s0 + $0x88] sm:$0xff] }
   0x8   :  { %v180_v44 = vadd.f32 %v179_v40, %v178_v39  ;;  %v151_v46 = vmul.f32 %v44_v13, %v44_v13  ;;  %v183_v47 = vsel %vm72_vm1, %v149_v35, 0.0  ;;  %v98_v51 = vsel %vm72_vm1, %v52_v48, 0.0 }
   0x9   :  { %v81_v17 = vadd.f32 %v80_v12, %v79_v14  ;;  %v152_v52 = vmul.f32 %v45_v16, %v45_v16  ;;  %v185_v53 = vsel %vm72_vm1, %v150_v38, 0.0  ;;  %v100_v57 = vsel %vm72_vm1, %v53_v54, 0.0  ;;  %v57_v14 = vld [vmem:[%s462_s0 + $0x90] sm:$0xff] }
   0xa   :  { %v182_v50 = vadd.f32 %v181_v41, %v180_v44  ;;  %v153_v58 = vmul.f32 %v46_v19, %v46_v19  ;;  %v187_v59 = vsel %vm72_vm1, %v151_v46, 0.0  ;;  %v102_v63 = vsel %vm72_vm1, %v54_v60, 0.0  ;;  %v61_v38 = vld [vmem:[%s462_s0 + $0xb0] sm:$0xff]  ;;  %v62_v44 = vld [vmem:[%s462_s0 + $0xb8] sm:$0xff] }
   0xb   :  { %v83_v20 = vadd.f32 %v82_v15, %v81_v17  ;;  %v154_v0 = vmul.f32 %v47_v22, %v47_v22  ;;  %v189_v1 = vsel %vm72_vm1, %v152_v52, 0.0  ;;  %v104_v5 = vsel %vm72_vm1, %v55_v2, 0.0 }
   0xc   :  { %v184_v56 = vadd.f32 %v183_v47, %v182_v50  ;;  %v155_v6 = vmul.f32 %v48_v25, %v48_v25  ;;  %v191_v7 = vsel %vm72_vm1, %v153_v58, 0.0  ;;  %v106_v11 = vsel %vm72_vm1, %v56_v8, 0.0  ;;  %v63_v50 = vld [vmem:[%s462_s0 + $0xc0] sm:$0xff] }
   0xd   :  { %v85_v23 = vadd.f32 %v84_v18, %v83_v20  ;;  %v156_v12 = vmul.f32 %v49_v31, %v49_v31  ;;  %v193_v13 = vsel %vm72_vm1, %v154_v0, 0.0  ;;  %v108_v17 = vsel %vm72_vm1, %v57_v14, 0.0  ;;  %v58_v20 = vld [vmem:[%s462_s0 + $0x98] sm:$0xff] }
   0xe   :  { %v186_v62 = vadd.f32 %v185_v53, %v184_v56  ;;  %v157_v18 = vmul.f32 %v50_v33, %v50_v33  ;;  %v195_v19 = vsel %vm72_vm1, %v155_v6, 0.0  ;;  %v159_v30 = vmul.f32 %v52_v48, %v52_v48  ;;  %v64_v56 = vld [vmem:[%s462_s0 + $0xc8] sm:$0xff] }
   0xf   :  { %v87_v26 = vadd.f32 %v86_v21, %v85_v23  ;;  %v110_v23 = vsel %vm72_vm1, %v58_v20, 0.0  ;;  %v197_v25 = vsel %vm72_vm1, %v156_v12, 0.0  ;;  %v116_v41 = vsel %vm72_vm1, %v61_v38, 0.0 }
  0x10   :  { %v188_v4 = vadd.f32 %v187_v59, %v186_v62  ;;  %v199_v31 = vsel %vm72_vm1, %v157_v18, 0.0  ;;  %v118_v47 = vsel %vm72_vm1, %v62_v44, 0.0  ;;  %v162_v48 = vmul.f32 %v55_v2, %v55_v2  ;;  %v65_v62 = vld [vmem:[%s462_s0 + $0xd0] sm:$0xff] }
  0x11   :  { %v89_v32 = vadd.f32 %v88_v24, %v87_v26  ;;  %v158_v24 = vmul.f32 %v51_v42, %v51_v42  ;;  %v59_v26 = vld [vmem:[%s462_s0 + $0xa0] sm:$0xff]  ;;  %v161_v42 = vmul.f32 %v54_v60, %v54_v60  ;;  %v120_v53 = vsel %vm72_vm1, %v63_v50, 0.0 }
  0x12   :  { %v190_v10 = vadd.f32 %v189_v1, %v188_v4  ;;  %v112_v29 = vsel %vm72_vm1, %v59_v26, 0.0  ;;  %v122_v59 = vsel %vm72_vm1, %v64_v56, 0.0  ;;  %v164_v60 = vmul.f32 %v57_v14, %v57_v14  ;;  %v66_v4 = vld [vmem:[%s462_s0 + $0xd8] sm:$0xff] }
  0x13   :  { %v91_v36 = vadd.f32 %v90_v27, %v89_v32  ;;  %v60_v32 = vld [vmem:[%s462_s0 + $0xa8] sm:$0xff]  ;;  %v124_v1 = vsel %vm72_vm1, %v65_v62, 0.0  ;;  %v165_v2 = vmul.f32 %v58_v20, %v58_v20  ;;  %v168_v20 = vmul.f32 %v61_v38, %v61_v38 }
  0x14   :  { %v192_v16 = vadd.f32 %v191_v7, %v190_v10  ;;  %v114_v35 = vsel %vm72_vm1, %v60_v32, 0.0  ;;  %v126_v7 = vsel %vm72_vm1, %v66_v4, 0.0  ;;  %v67_v10 = vld [vmem:[%s462_s0 + $0xe0] sm:$0xff]  ;;  %v167_v14 = vmul.f32 %v60_v32, %v60_v32 }
  0x15   :  { %v93_v43 = vadd.f32 %v92_v34, %v91_v36  ;;  %v160_v36 = vmul.f32 %v53_v54, %v53_v54  ;;  %v163_v54 = vmul.f32 %v56_v8, %v56_v8  ;;  %v166_v8 = vmul.f32 %v59_v26, %v59_v26 }
  0x16   :  { %v194_v22 = vadd.f32 %v193_v13, %v192_v16  ;;  %v128_v13 = vsel %vm72_vm1, %v67_v10, 0.0  ;;  %v68_v16 = vld [vmem:[%s462_s0 + $0xe8] sm:$0xff]  ;;  %v169_v26 = vmul.f32 %v62_v44, %v62_v44  ;;  %v170_v32 = vmul.f32 %v63_v50, %v63_v50 }
  0x17   :  { %v95_v49 = vadd.f32 %v94_v37, %v93_v43  ;;  %v201_v37 = vsel %vm72_vm1, %v158_v24, 0.0  ;;  %v203_v43 = vsel %vm72_vm1, %v159_v30, 0.0  ;;  %v173_v44 = vmul.f32 %v66_v4, %v66_v4 }
  0x18   :  { %v196_v28 = vadd.f32 %v195_v19, %v194_v22  ;;  %v130_v19 = vsel %vm72_vm1, %v68_v16, 0.0  ;;  %v69_v22 = vld [vmem:[%s462_s0 + $0xf0] sm:$0xff] }
  0x19   :  { %v97_v55 = vadd.f32 %v96_v45, %v95_v49  ;;  %v205_v49 = vsel %vm72_vm1, %v160_v36, 0.0  ;;  %v171_v36 = vmul.f32 %v64_v56, %v64_v56  ;;  %v176_v56 = vmul.f32 %v69_v22, %v69_v22 }
  0x1a   :  { %v198_v34 = vadd.f32 %v197_v25, %v196_v28  ;;  %v132_v25 = vsel %vm72_vm1, %v69_v22, 0.0  ;;  %v70_v28 = vld [vmem:[%s462_s0 + $0xf8] sm:$0xff] }
  0x1b   :  { %v99_v61 = vadd.f32 %v98_v51, %v97_v55  ;;  %v207_v55 = vsel %vm72_vm1, %v161_v42, 0.0 }
  0x1c   :  { %v200_v40 = vadd.f32 %v199_v31, %v198_v34  ;;  %v134_v31 = vsel %vm72_vm1, %v70_v28, 0.0 }
  0x1d   :  { %v101_v3 = vadd.f32 %v100_v57, %v99_v61  ;;  %v209_v61 = vsel %vm72_vm1, %v162_v48, 0.0  ;;  %v174_v48 = vmul.f32 %v67_v10, %v67_v10 }
  0x1e   :  { %v202_v46 = vadd.f32 %v201_v37, %v200_v40  ;;  %v223_v37 = vsel %vm72_vm1, %v169_v26, 0.0  ;;  %v172_v40 = vmul.f32 %v65_v62, %v65_v62 }
  0x1f   :  { %v103_v9 = vadd.f32 %v102_v63, %v101_v3  ;;  %v211_v3 = vsel %vm72_vm1, %v163_v54, 0.0 }
  0x20   :  { %v204_v52 = vadd.f32 %v203_v43, %v202_v46 }
  0x21   :  { %v105_v15 = vadd.f32 %v104_v5, %v103_v9  ;;  %v213_v9 = vsel %vm72_vm1, %v164_v60, 0.0  ;;  %v71_v60 = vld [vmem:[%s463_s1] sm:$0x1] }
  0x22   :  { %v206_v58 = vadd.f32 %v205_v49, %v204_v52  ;;  %v229_v49 = vsel %vm72_vm1, %v172_v40, 0.0  ;;  %v175_v52 = vmul.f32 %v68_v16, %v68_v16 }
  0x23   :  { %v107_v21 = vadd.f32 %v106_v11, %v105_v15  ;;  %v215_v15 = vsel %vm72_vm1, %v165_v2, 0.0 }
  0x24   :  { %v208_v0 = vadd.f32 %v207_v55, %v206_v58  ;;  %v235_v62 = vsel %vm72_vm1, %v175_v52, 0.0 }
  0x25   :  { %v109_v27 = vadd.f32 %v108_v17, %v107_v21  ;;  %v217_v21 = vsel %vm72_vm1, %v166_v8, 0.0 }
  0x26   :  { %v210_v6 = vadd.f32 %v209_v61, %v208_v0  ;;  %v177_v61 = vmul.f32 %v70_v28, %v70_v28 }
  0x27   :  { %v111_v33 = vadd.f32 %v110_v23, %v109_v27  ;;  %v219_v27 = vsel %vm72_vm1, %v167_v14, 0.0 }
  0x28   :  { %v212_v12 = vadd.f32 %v211_v3, %v210_v6  ;;  %v239_v4 = vsel %vm72_vm1, %v177_v61, 0.0 }
  0x29   :  { %v113_v39 = vadd.f32 %v112_v29, %v111_v33  ;;  %v221_v33 = vsel %vm72_vm1, %v168_v20, 0.0 }
  0x2a   :  { %v214_v18 = vadd.f32 %v213_v9, %v212_v12  ;;  %v145_v12 = vld [vmem:[%s464_s2] sm:$0x1] }
  0x2b   :  { %v115_v45 = vadd.f32 %v114_v35, %v113_v39 }
  0x2c   :  { %v216_v24 = vadd.f32 %v215_v15, %v214_v18 }
  0x2d   :  { %v117_v51 = vadd.f32 %v116_v41, %v115_v45  ;;  %v225_v41 = vsel %vm72_vm1, %v170_v32, 0.0  ;;  %v227_v45 = vsel %vm72_vm1, %v171_v36, 0.0 }
  0x2e   :  { %v218_v30 = vadd.f32 %v217_v21, %v216_v24 }
  0x2f   :  { %v119_v57 = vadd.f32 %v118_v47, %v117_v51 }
  0x30   :  { %v220_v35 = vadd.f32 %v219_v27, %v218_v30 }
  0x31   :  { %v121_v63 = vadd.f32 %v120_v53, %v119_v57  ;;  %v231_v53 = vsel %vm72_vm1, %v173_v44, 0.0  ;;  %v233_v57 = vsel %vm72_vm1, %v174_v48, 0.0 }
  0x32   :  { %v222_v39 = vadd.f32 %v221_v33, %v220_v35 }
  0x33   :  { %v123_v5 = vadd.f32 %v122_v59, %v121_v63 }
  0x34   :  { %v224_v43 = vadd.f32 %v223_v37, %v222_v39 }
  0x35   :  { %v125_v11 = vadd.f32 %v124_v1, %v123_v5  ;;  %v237_v1 = vsel %vm72_vm1, %v176_v56, 0.0 }
  0x36   :  { %v226_v47 = vadd.f32 %v225_v41, %v224_v43 }
  0x37   :  { %v127_v17 = vadd.f32 %v126_v7, %v125_v11 }
  0x38   :  { %v228_v51 = vadd.f32 %v227_v45, %v226_v47 }
  0x39   :  { %v129_v23 = vadd.f32 %v128_v13, %v127_v17 }
  0x3a   :  { %v230_v55 = vadd.f32 %v229_v49, %v228_v51 }
  0x3b   :  { %v131_v29 = vadd.f32 %v130_v19, %v129_v23 }
  0x3c   :  { %v232_v59 = vadd.f32 %v231_v53, %v230_v55 }
  0x3d   :  { %v133_v34 = vadd.f32 %v132_v25, %v131_v29 }
  0x3e   :  { %v234_v0 = vadd.f32 %v233_v57, %v232_v59 }
  0x3f   :  { %v135_v38 = vadd.f32 %v134_v31, %v133_v34 }
  0x40   :  { %v236_v3 = vadd.f32 %v235_v62, %v234_v0 }
  0x41   :  { %v136_v42 = vrot.slane %v135_v38, 4 }
  0x42   :  { %v238_v5 = vadd.f32 %v237_v1, %v236_v3 }
  0x43   :  { %v137_v46 = vadd.f32 %v136_v42, %v135_v38 }
  0x44   :  { %v240_v6 = vadd.f32 %v239_v4, %v238_v5 }
  0x45   :  { %v138_v50 = vrot.slane %v137_v46, 2 }
  0x46   :  { %v241_v7 = vrot.slane %v240_v6, 4 }
  0x47   :  { %v139_v54 = vadd.f32 %v138_v50, %v137_v46 }
  0x48   :  { %v242_v8 = vadd.f32 %v241_v7, %v240_v6 }
  0x49   :  { %v140_v58 = vrot.slane %v139_v54, 1 }
  0x4a   :  { %v243_v9 = vrot.slane %v242_v8, 2 }
  0x4b   :  { %v141_v63 = vadd.f32 %v140_v58, %v139_v54 }
  0x4c   :  { %v244_v10 = vadd.f32 %v243_v9, %v242_v8 }
  0x4d   :  { %v142_v2 = vadd.f32 %v141_v63, %v71_v60 }
  0x4e   :  { %v245_v11 = vrot.slane %v244_v10, 1 }
  0x4f   :  { %144 = vst.msk [vmem:[%s463_s1] sm:$0x1] %vm36_vm0, %v142_v2 }
  0x50   :  { %v246_v13 = vadd.f32 %v245_v11, %v244_v10 }
  0x52   :  { %v247_v14 = vadd.f32 %v246_v13, %v145_v12 }
  0x54   :  { %248 = vst.msk [vmem:[%s464_s2] sm:$0x1] %vm36_vm0, %v247_v14 }

// kernel: model_c_forward.4
= control target key start
LH: loop header
LB: loop body
LE: loop exit
PB: predicated region body
PF: predicated region fallthrough
CT: control target
= control target key end

     0   :  { %vm131_vm0 = vcmask 261120   ;;  %v924_v50 = vmov 0.0   ;;  %s1248_s1 = inlined_call_operand.vmem [shape: bf16[32,128], index: 1, kind: input, shape index: {}]   ;;  %s1249_s0 = inlined_call_operand.vmem [shape: f32[256,32], index: 0, kind: input, shape index: {}]   ;;  %s1250_s4 = inlined_call_operand.vmem [shape: f32[1,1,128], index: 4, kind: output, shape index: {1}]   ;;  %s1251_s5 = inlined_call_operand.vmem [shape: f32[1,1,128], index: 5, kind: output, shape index: {2}]   ;;  %s1252_s2 = inlined_call_operand.vmem [shape: f32[1,128], index: 2, kind: input, shape index: {}]   ;;  %s1253_s3 = inlined_call_operand.vmem [shape: bf16[256,128], index: 3, kind: output, shape index: {0}]  }
   0x1   :  { %v922_v0 = vld [vmem:[%s1248_s1 + $0x8] sm:$0xff]   ;;  %v923_v1 = vld [vmem:[%s1248_s1] sm:$0xff]   ;;  %v62_v5 = vld [vmem:[%s1249_s0 + $0x10] sm:$0xff]  ;;  %58 = vst [vmem:[%s1250_s4] sm:$0x1] %v924_v50 }
   0x2   :  { %881 = vmatprep.subr.bf16.mxu0 %v922_v0  ;;  %v60_v2 = vld [vmem:[%s1249_s0] sm:$0xff]  ;;  %v61_v3 = vld [vmem:[%s1249_s0 + $0x8] sm:$0xff]  ;;  %917 = vmatprep.subr.bf16.mxu1 %v922_v0  ;;  %v63_v6 = vld [vmem:[%s1249_s0 + $0x18] sm:$0xff]  ;;  %59 = vst [vmem:[%s1251_s5] sm:$0x1] %v924_v50 }
   0x3   :  { %882 = vmatpush3.bf16.msra.mxu0 %v922_v0  ;;  %v92_v4 = vpack.c.bf16 %v61_v3, %v60_v2  ;;  %919 = vmatpush3.bf16.msra.mxu1 %v922_v0  ;;  %v64_v7 = vld [vmem:[%s1249_s0 + $0x20] sm:$0xff]  ;;  %v65_v8 = vld [vmem:[%s1249_s0 + $0x28] sm:$0xff]  ;;  %v93_v9 = vpack.c.bf16 %v63_v6, %v62_v5  ;;  %v78_v14 = vld [vmem:[%s1249_s0 + $0x90] sm:$0xff] }
   0x4   :  { %883 = vmatprep.subr.bf16.mxu0 %v923_v1  ;;  %918 = vmatprep.subr.bf16.mxu1 %v923_v1  ;;  %v94_v10 = vpack.c.bf16 %v65_v8, %v64_v7  ;;  %v76_v11 = vld [vmem:[%s1249_s0 + $0x80] sm:$0xff]  ;;  %v77_v12 = vld [vmem:[%s1249_s0 + $0x88] sm:$0xff]  ;;  %v79_v15 = vld [vmem:[%s1249_s0 + $0x98] sm:$0xff] }
   0x5   :  { %885 = vmatprep.mubr.msk.bf16.mxu0 %vm131_vm0, %v92_v4  ;;  %v100_v13 = vpack.c.bf16 %v77_v12, %v76_v11  ;;  %v80_v16 = vld [vmem:[%s1249_s0 + $0xa0] sm:$0xff]  ;;  %v101_v17 = vpack.c.bf16 %v79_v15, %v78_v14  ;;  %v81_v18 = vld [vmem:[%s1249_s0 + $0xa8] sm:$0xff]  ;;  %v66_v20 = vld [vmem:[%s1249_s0 + $0x30] sm:$0xff] }
   0x6   :  { %v102_v19 = vpack.c.bf16 %v81_v18, %v80_v16  ;;  %v67_v21 = vld [vmem:[%s1249_s0 + $0x38] sm:$0xff]  ;;  %v68_v22 = vld [vmem:[%s1249_s0 + $0x40] sm:$0xff]  ;;  %v69_v23 = vld [vmem:[%s1249_s0 + $0x48] sm:$0xff] }
   0x7   :  { %884 = vmatpush3.bf16.msra.mxu0 %v923_v1  ;;  %920 = vmatpush3.bf16.msra.mxu1 %v923_v1  ;;  %v82_v24 = vld [vmem:[%s1249_s0 + $0xb0] sm:$0xff]  ;;  %v83_v25 = vld [vmem:[%s1249_s0 + $0xb8] sm:$0xff]  ;;  %v84_v26 = vld [vmem:[%s1249_s0 + $0xc0] sm:$0xff]  ;;  %v95_v28 = vpack.c.bf16 %v67_v21, %v66_v20  ;;  %v96_v29 = vpack.c.bf16 %v69_v23, %v68_v22 }
   0x8   :  { %901 = vmatprep.mubr.msk.bf16.mxu1 %vm131_vm0, %v100_v13  ;;  %v85_v27 = vld [vmem:[%s1249_s0 + $0xc8] sm:$0xff]  ;;  %v103_v30 = vpack.c.bf16 %v83_v25, %v82_v24  ;;  %v70_v32 = vld [vmem:[%s1249_s0 + $0x50] sm:$0xff]  ;;  %v71_v33 = vld [vmem:[%s1249_s0 + $0x58] sm:$0xff] }
   0x9   :  { %v104_v31 = vpack.c.bf16 %v85_v27, %v84_v26  ;;  %v72_v34 = vld [vmem:[%s1249_s0 + $0x60] sm:$0xff]  ;;  %v73_v35 = vld [vmem:[%s1249_s0 + $0x68] sm:$0xff]  ;;  %v86_v36 = vld [vmem:[%s1249_s0 + $0xd0] sm:$0xff]  ;;  %v97_v40 = vpack.c.bf16 %v71_v33, %v70_v32 }
   0xa   :  { %886 = vmatmul.mubr.msk.bf16.vlgmr.msra.gmra.mxu0 %vm131_vm0, %v93_v9  ;;  %902 = vmatmul.mubr.msk.bf16.vlgmr.msra.gmra.mxu1 %vm131_vm0, %v101_v17  ;;  %v87_v37 = vld [vmem:[%s1249_s0 + $0xd8] sm:$0xff]  ;;  %v88_v38 = vld [vmem:[%s1249_s0 + $0xe0] sm:$0xff]  ;;  %v89_v39 = vld [vmem:[%s1249_s0 + $0xe8] sm:$0xff]  ;;  %v98_v41 = vpack.c.bf16 %v73_v35, %v72_v34 }
   0xb   :  { %889 = vmatprep.mubr.msk.bf16.mxu0 %vm131_vm0, %v94_v10  ;;  %905 = vmatprep.mubr.msk.bf16.mxu1 %vm131_vm0, %v102_v19  ;;  %v105_v42 = vpack.c.bf16 %v87_v37, %v86_v36  ;;  %v106_v43 = vpack.c.bf16 %v89_v39, %v88_v38  ;;  %v74_v44 = vld [vmem:[%s1249_s0 + $0x70] sm:$0xff]  ;;  %v75_v45 = vld [vmem:[%s1249_s0 + $0x78] sm:$0xff]  ;;  %v1082_v52 = vld [vmem:[%s1252_s2] ss:$0 sm:$0xff] }
   0xc   :  { %v90_v46 = vld [vmem:[%s1249_s0 + $0xf0] sm:$0xff]  ;;  %v91_v47 = vld [vmem:[%s1249_s0 + $0xf8] sm:$0xff]  ;;  %v99_v48 = vpack.c.bf16 %v75_v45, %v74_v44 }
   0xd   :  { %v107_v49 = vpack.c.bf16 %v91_v47, %v90_v46 }
  0x12   :  { %890 = vmatmul.mubr.msk.bf16.gmra.mxu0 %vm131_vm0, %v95_v28  ;;  %906 = vmatmul.mubr.msk.bf16.gmra.mxu1 %vm131_vm0, %v103_v30 }
  0x13   :  { %893 = vmatprep.mubr.msk.bf16.mxu0 %vm131_vm0, %v96_v29  ;;  %909 = vmatprep.mubr.msk.bf16.mxu1 %vm131_vm0, %v104_v31 }
  0x1a   :  { %894 = vmatmul.mubr.msk.bf16.gmra.mxu0 %vm131_vm0, %v97_v40  ;;  %910 = vmatmul.mubr.msk.bf16.gmra.mxu1 %vm131_vm0, %v105_v42 }
  0x1b   :  { %897 = vmatprep.mubr.msk.bf16.mxu0 %vm131_vm0, %v98_v41  ;;  %913 = vmatprep.mubr.msk.bf16.mxu1 %vm131_vm0, %v106_v43 }
  0x22   :  { %898 = vmatmul.mubr.msk.bf16.gmra.mxu0 %vm131_vm0, %v99_v48  ;;  %914 = vmatmul.mubr.msk.bf16.gmra.mxu1 %vm131_vm0, %v107_v49 }
  0xca   :  { %v887_v51 = vpop.f32.mrf.mxu0  ;;  %v903_v53 = vpop.f32.mrf.mxu1 }
  0xcb   :  { %v287_v55 = vadd.f32 %v903_v53, %v1082_v52  ;;  %v223_v56 = vadd.f32 %v887_v51, %v1082_v52 }
  0xcc   :  { %v214_v54 = vpop.f32.mrf.mxu0  ;;  %v278_v58 = vpop.f32.mrf.mxu1 }
  0xcd   :  { %v215_v57 = vadd.f32 %v1082_v52, %v214_v54  ;;  %v279_v60 = vadd.f32 %v1082_v52, %v278_v58  ;;  %v1089_v0 = vmax.f32 %v287_v55, 0.0  ;;  %v343_v2 = vmax.f32 %v223_v56, 0.0 }
  0xce   :  { %v888_v59 = vpop.f32.mrf.mxu0  ;;  %v904_v62 = vpop.f32.mrf.mxu1 }
  0xcf   :  { %v226_v61 = vadd.f32 %v888_v59, %v1082_v52  ;;  %v290_v1 = vadd.f32 %v904_v62, %v1082_v52  ;;  %v341_v3 = vmax.f32 %v215_v57, 0.0  ;;  %v1093_v8 = vmax.f32 %v279_v60, 0.0 }
  0xd0   :  { %v217_v63 = vpop.f32.mrf.mxu0  ;;  %v281_v6 = vpop.f32.mrf.mxu1  ;;  %v576_v24 = vmul.f32 %v343_v2, %v343_v2 }
  0xd1   :  { %v344_v4 = vmax.f32 %v226_v61, 0.0  ;;  %v218_v5 = vadd.f32 %v1082_v52, %v217_v63  ;;  %v1095_v9 = vmax.f32 %v290_v1, 0.0  ;;  %v282_v10 = vadd.f32 %v1082_v52, %v281_v6 }
  0xd2   :  { %v891_v7 = vpop.f32.mrf.mxu0  ;;  %v907_v14 = vpop.f32.mrf.mxu1  ;;  %v574_v19 = vmul.f32 %v341_v3, %v341_v3 }
  0xd3   :  { %v776_v11 = vpack.c.bf16 %v344_v4, %v343_v2  ;;  %v342_v12 = vmax.f32 %v218_v5, 0.0  ;;  %v239_v13 = vadd.f32 %v891_v7, %v1082_v52  ;;  %v816_v16 = vpack.c.bf16 %v1095_v9, %v1089_v0 }
  0xd4   :  { %v230_v15 = vpop.f32.mrf.mxu0  ;;  %v1101_v17 = vmax.f32 %v282_v10, 0.0  ;;  %v303_v18 = vadd.f32 %v907_v14, %v1082_v52  ;;  %v294_v23 = vpop.f32.mrf.mxu1  ;;  %v577_v25 = vmul.f32 %v344_v4, %v344_v4 }
  0xd5   :  { %848 = vst [vmem:[%s1253_s3 + $0x8] sm:$0xff] %v776_v11   ;;  %v771_v20 = vpack.c.bf16 %v342_v12, %v341_v3  ;;  %v534_v21 = vadd.f32 %v342_v12, %v341_v3  ;;  %v575_v22 = vmul.f32 %v342_v12, %v342_v12  ;;  %v231_v26 = vadd.f32 %v1082_v52, %v230_v15 }
  0xd6   :  { %v892_v27 = vpop.f32.mrf.mxu0  ;;  %856 = vst [vmem:[%s1253_s3 + $0x48] sm:$0xff] %v816_v16   ;;  %v811_v28 = vpack.c.bf16 %v1101_v17, %v1093_v8  ;;  %v347_v31 = vmax.f32 %v239_v13, 0.0  ;;  %v908_v33 = vpop.f32.mrf.mxu1  ;;  %v1120_v36 = vmax.f32 %v303_v18, 0.0  ;;  %v295_v37 = vadd.f32 %v1082_v52, %v294_v23 }
  0xd7   :  { %772 = vst [vmem:[%s1253_s3] sm:$0xff] %v771_v20   ;;  %v535_v29 = vadd.f32 %v534_v21, %v343_v2  ;;  %v606_v30 = vadd.f32 %v575_v22, %v574_v19  ;;  %v242_v32 = vadd.f32 %v892_v27, %v1082_v52  ;;  %v345_v34 = vmax.f32 %v231_v26, 0.0 }
  0xd8   :  { %v233_v35 = vpop.f32.mrf.mxu0  ;;  %855 = vst [vmem:[%s1253_s3 + $0x40] sm:$0xff] %v811_v28   ;;  %v306_v38 = vadd.f32 %v908_v33, %v1082_v52  ;;  %v297_v43 = vpop.f32.mrf.mxu1  ;;  %v1128_v51 = vmax.f32 %v295_v37, 0.0  ;;  %v580_v3 = vmul.f32 %v347_v31, %v347_v31 }
  0xd9   :  { %v607_v39 = vadd.f32 %v606_v30, %v576_v24  ;;  %v536_v40 = vadd.f32 %v535_v29, %v344_v4  ;;  %v348_v41 = vmax.f32 %v242_v32, 0.0  ;;  %v234_v42 = vadd.f32 %v1082_v52, %v233_v35 }
  0xda   :  { %v578_v44 = vmul.f32 %v345_v34, %v345_v34  ;;  %v895_v45 = vpop.f32.mrf.mxu0  ;;  %v1125_v46 = vmax.f32 %v306_v38, 0.0  ;;  %v298_v47 = vadd.f32 %v1082_v52, %v297_v43  ;;  %v911_v53 = vpop.f32.mrf.mxu1 }
  0xdb   :  { %v537_v48 = vadd.f32 %v536_v40, %v345_v34  ;;  %v608_v49 = vadd.f32 %v607_v39, %v577_v25  ;;  %v786_v50 = vpack.c.bf16 %v348_v41, %v347_v31  ;;  %v346_v54 = vmax.f32 %v234_v42, 0.0 }
  0xdc   :  { %v246_v55 = vpop.f32.mrf.mxu0  ;;  %v826_v56 = vpack.c.bf16 %v1125_v46, %v1120_v36  ;;  %v255_v58 = vadd.f32 %v895_v45, %v1082_v52  ;;  %v1137_v60 = vmax.f32 %v298_v47, 0.0  ;;  %v310_v61 = vpop.f32.mrf.mxu1  ;;  %v319_v13 = vadd.f32 %v911_v53, %v1082_v52 }
  0xdd   :  { %v609_v57 = vadd.f32 %v608_v49, %v578_v44  ;;  %850 = vst [vmem:[%s1253_s3 + $0x18] sm:$0xff] %v786_v50   ;;  %v247_v59 = vadd.f32 %v1082_v52, %v246_v55  ;;  %v781_v62 = vpack.c.bf16 %v346_v54, %v345_v34  ;;  %v538_v63 = vadd.f32 %v537_v48, %v346_v54 }
  0xde   :  { %v579_v1 = vmul.f32 %v346_v54, %v346_v54  ;;  %v896_v2 = vpop.f32.mrf.mxu0  ;;  %858 = vst [vmem:[%s1253_s3 + $0x58] sm:$0xff] %v826_v56   ;;  %v821_v5 = vpack.c.bf16 %v1137_v60, %v1128_v51  ;;  %v912_v6 = vpop.f32.mrf.mxu1  ;;  %v351_v14 = vmax.f32 %v255_v58, 0.0  ;;  %v581_v19 = vmul.f32 %v348_v41, %v348_v41 }
  0xdf   :  { %v258_v4 = vadd.f32 %v896_v2, %v1082_v52  ;;  %849 = vst [vmem:[%s1253_s3 + $0x10] sm:$0xff] %v781_v62   ;;  %v539_v7 = vadd.f32 %v538_v63, %v347_v31  ;;  %v349_v11 = vmax.f32 %v247_v59, 0.0  ;;  %v322_v23 = vadd.f32 %v912_v6, %v1082_v52 }
  0xe0   :  { %v610_v10 = vadd.f32 %v609_v57, %v579_v1  ;;  %v249_v12 = vpop.f32.mrf.mxu0  ;;  %857 = vst [vmem:[%s1253_s3 + $0x50] sm:$0xff] %v821_v5   ;;  %v313_v18 = vpop.f32.mrf.mxu1  ;;  %v311_v26 = vadd.f32 %v1082_v52, %v310_v61  ;;  %v1155_v32 = vmax.f32 %v319_v13, 0.0  ;;  %v584_v39 = vmul.f32 %v351_v14, %v351_v14 }
  0xe1   :  { %v352_v15 = vmax.f32 %v258_v4, 0.0  ;;  %v250_v16 = vadd.f32 %v1082_v52, %v249_v12  ;;  %v540_v21 = vadd.f32 %v539_v7, %v348_v41  ;;  %v582_v29 = vmul.f32 %v349_v11, %v349_v11 }
  0xe2   :  { %v611_v20 = vadd.f32 %v610_v10, %v580_v3  ;;  %v899_v22 = vpop.f32.mrf.mxu0  ;;  %v915_v27 = vpop.f32.mrf.mxu1  ;;  %v1162_v43 = vmax.f32 %v322_v23, 0.0  ;;  %v1168_v47 = vmax.f32 %v311_v26, 0.0  ;;  %v314_v48 = vadd.f32 %v1082_v52, %v313_v18 }
  0xe3   :  { %v796_v24 = vpack.c.bf16 %v352_v15, %v351_v14  ;;  %v350_v25 = vmax.f32 %v250_v16, 0.0  ;;  %v541_v28 = vadd.f32 %v540_v21, %v349_v11  ;;  %v271_v35 = vadd.f32 %v899_v22, %v1082_v52 }
  0xe4   :  { %v612_v30 = vadd.f32 %v611_v20, %v581_v19  ;;  %v262_v31 = vpop.f32.mrf.mxu0  ;;  %v326_v38 = vpop.f32.mrf.mxu1  ;;  %v585_v44 = vmul.f32 %v352_v15, %v352_v15  ;;  %v836_v56 = vpack.c.bf16 %v1162_v43, %v1155_v32  ;;  %v1174_v61 = vmax.f32 %v314_v48, 0.0 }
  0xe5   :  { %852 = vst [vmem:[%s1253_s3 + $0x28] sm:$0xff] %v796_v24   ;;  %v791_v33 = vpack.c.bf16 %v350_v25, %v349_v11  ;;  %v583_v34 = vmul.f32 %v350_v25, %v350_v25  ;;  %v263_v37 = vadd.f32 %v1082_v52, %v262_v31  ;;  %v542_v41 = vadd.f32 %v541_v28, %v350_v25 }
  0xe6   :  { %v613_v40 = vadd.f32 %v612_v30, %v582_v29  ;;  %v900_v42 = vpop.f32.mrf.mxu0  ;;  %v916_v49 = vpop.f32.mrf.mxu1  ;;  %v355_v57 = vmax.f32 %v271_v35, 0.0  ;;  %860 = vst [vmem:[%s1253_s3 + $0x68] sm:$0xff] %v836_v56   ;;  %v335_v1 = vadd.f32 %v915_v27, %v1082_v52  ;;  %v327_v2 = vadd.f32 %v1082_v52, %v326_v38 }
  0xe7   :  { %851 = vst [vmem:[%s1253_s3 + $0x20] sm:$0xff] %v791_v33   ;;  %v274_v45 = vadd.f32 %v900_v42, %v1082_v52  ;;  %v543_v50 = vadd.f32 %v542_v41, %v351_v14  ;;  %v353_v54 = vmax.f32 %v263_v37, 0.0  ;;  %v831_v5 = vpack.c.bf16 %v1174_v61, %v1168_v47 }
  0xe8   :  { %v614_v53 = vadd.f32 %v613_v40, %v583_v34  ;;  %v265_v55 = vpop.f32.mrf.mxu0  ;;  %v329_v6 = vpop.f32.mrf.mxu1  ;;  %v371_v14 = vmax.f32 %v335_v1, 0.0  ;;  %v369_v19 = vmax.f32 %v327_v2, 0.0  ;;  %v588_v22 = vmul.f32 %v355_v57, %v355_v57 }
  0xe9   :  { %v356_v58 = vmax.f32 %v274_v45, 0.0  ;;  %v266_v59 = vadd.f32 %v1082_v52, %v265_v55  ;;  %v544_v63 = vadd.f32 %v543_v50, %v352_v15  ;;  %v586_v10 = vmul.f32 %v353_v54, %v353_v54  ;;  %859 = vst [vmem:[%s1253_s3 + $0x60] sm:$0xff] %v831_v5  }
  0xea   :  { %v615_v62 = vadd.f32 %v614_v53, %v584_v39  ;;  %v338_v15 = vadd.f32 %v916_v49, %v1082_v52  ;;  %v330_v20 = vadd.f32 %v1082_v52, %v329_v6  ;;  %v590_v52 = vmul.f32 %v1093_v8, %v1093_v8 }
  0xeb   :  { %v806_v3 = vpack.c.bf16 %v356_v58, %v355_v57  ;;  %v354_v4 = vmax.f32 %v266_v59, 0.0  ;;  %v545_v7 = vadd.f32 %v544_v63, %v353_v54  ;;  %v589_v27 = vmul.f32 %v356_v58, %v356_v58 }
  0xec   :  { %v616_v11 = vadd.f32 %v615_v62, %v585_v44  ;;  %v372_v21 = vmax.f32 %v338_v15, 0.0  ;;  %v370_v25 = vmax.f32 %v330_v20, 0.0  ;;  %v591_v35 = vmul.f32 %v1101_v17, %v1101_v17 }
  0xed   :  { %854 = vst [vmem:[%s1253_s3 + $0x38] sm:$0xff] %v806_v3   ;;  %v801_v12 = vpack.c.bf16 %v354_v4, %v353_v54  ;;  %v587_v13 = vmul.f32 %v354_v4, %v354_v4  ;;  %v546_v18 = vadd.f32 %v545_v7, %v354_v4  ;;  %v592_v38 = vmul.f32 %v1089_v0, %v1089_v0 }
  0xee   :  { %v617_v16 = vadd.f32 %v616_v11, %v586_v10  ;;  %v846_v26 = vpack.c.bf16 %v372_v21, %v371_v14  ;;  %v841_v30 = vpack.c.bf16 %v370_v25, %v369_v19  ;;  %v594_v45 = vmul.f32 %v1128_v51, %v1128_v51 }
  0xef   :  { %853 = vst [vmem:[%s1253_s3 + $0x30] sm:$0xff] %v801_v12   ;;  %v547_v23 = vadd.f32 %v546_v18, %v355_v57  ;;  %v595_v50 = vmul.f32 %v1137_v60, %v1137_v60  ;;  %v598_v57 = vmul.f32 %v1168_v47, %v1168_v47  ;;  %v599_v62 = vmul.f32 %v1174_v61, %v1174_v61 }
  0xf0   :  { %v618_v24 = vadd.f32 %v617_v16, %v587_v13  ;;  %862 = vst [vmem:[%s1253_s3 + $0x78] sm:$0xff] %v846_v26   ;;  %861 = vst [vmem:[%s1253_s3 + $0x70] sm:$0xff] %v841_v30   ;;  %v602_v4 = vmul.f32 %v369_v19, %v369_v19  ;;  %v603_v10 = vmul.f32 %v370_v25, %v370_v25 }
  0xf1   :  { %v548_v29 = vadd.f32 %v547_v23, %v356_v58  ;;  %v604_v11 = vmul.f32 %v371_v14, %v371_v14  ;;  %v605_v13 = vmul.f32 %v372_v21, %v372_v21 }
  0xf2   :  { %v619_v28 = vadd.f32 %v618_v24, %v588_v22 }
  0xf3   :  { %v549_v31 = vadd.f32 %v548_v29, %v1093_v8  ;;  %v593_v8 = vmul.f32 %v1095_v9, %v1095_v9 }
  0xf4   :  { %v620_v33 = vadd.f32 %v619_v28, %v589_v27 }
  0xf5   :  { %v550_v34 = vadd.f32 %v549_v31, %v1101_v17 }
  0xf6   :  { %v621_v37 = vadd.f32 %v620_v33, %v590_v52 }
  0xf7   :  { %v551_v39 = vadd.f32 %v550_v34, %v1089_v0  ;;  %v596_v0 = vmul.f32 %v1120_v36, %v1120_v36 }
  0xf8   :  { %v622_v40 = vadd.f32 %v621_v37, %v591_v35 }
  0xf9   :  { %v552_v42 = vadd.f32 %v551_v39, %v1095_v9  ;;  %v597_v9 = vmul.f32 %v1125_v46, %v1125_v46 }
  0xfa   :  { %v623_v41 = vadd.f32 %v622_v40, %v592_v38 }
  0xfb   :  { %v553_v44 = vadd.f32 %v552_v42, %v1128_v51 }
  0xfc   :  { %v624_v48 = vadd.f32 %v623_v41, %v593_v8 }
  0xfd   :  { %v554_v49 = vadd.f32 %v553_v44, %v1137_v60 }
  0xfe   :  { %v625_v17 = vadd.f32 %v624_v48, %v594_v45 }
  0xff   :  { %v555_v53 = vadd.f32 %v554_v49, %v1120_v36  ;;  %v600_v36 = vmul.f32 %v1155_v32, %v1155_v32 }
 0x100   :  { %v626_v54 = vadd.f32 %v625_v17, %v595_v50 }
 0x101   :  { %v556_v56 = vadd.f32 %v555_v53, %v1125_v46  ;;  %v601_v46 = vmul.f32 %v1162_v43, %v1162_v43 }
 0x102   :  { %v627_v55 = vadd.f32 %v626_v54, %v596_v0 }
 0x103   :  { %v557_v51 = vadd.f32 %v556_v56, %v1168_v47 }
 0x104   :  { %v628_v58 = vadd.f32 %v627_v55, %v597_v9 }
 0x105   :  { %v558_v60 = vadd.f32 %v557_v51, %v1174_v61 }
 0x106   :  { %v629_v59 = vadd.f32 %v628_v58, %v598_v57 }
 0x107   :  { %v559_v63 = vadd.f32 %v558_v60, %v1155_v32 }
 0x108   :  { %v630_v1 = vadd.f32 %v629_v59, %v599_v62 }
 0x109   :  { %v560_v3 = vadd.f32 %v559_v63, %v1162_v43 }
 0x10a   :  { %v631_v2 = vadd.f32 %v630_v1, %v600_v36 }
 0x10b   :  { %v561_v47 = vadd.f32 %v560_v3, %v369_v19 }
 0x10c   :  { %v632_v5 = vadd.f32 %v631_v2, %v601_v46 }
 0x10d   :  { %v562_v7 = vadd.f32 %v561_v47, %v370_v25  ;;  %v533_v25 = vld [vmem:[%s1250_s4] sm:$0x1] }
 0x10e   :  { %v633_v6 = vadd.f32 %v632_v5, %v602_v4 }
 0x10f   :  { %v563_v61 = vadd.f32 %v562_v7, %v371_v14 }
 0x110   :  { %v634_v12 = vadd.f32 %v633_v6, %v603_v10 }
 0x111   :  { %v564_v15 = vadd.f32 %v563_v61, %v372_v21  ;;  %v573_v21 = vld [vmem:[%s1251_s5] sm:$0x1] }
 0x112   :  { %v635_v16 = vadd.f32 %v634_v12, %v604_v11 }
 0x113   :  { %v565_v32 = vrot.slane %v564_v15, 4 }
 0x114   :  { %v636_v18 = vadd.f32 %v635_v16, %v605_v13 }
 0x115   :  { %v566_v20 = vadd.f32 %v565_v32, %v564_v15 }
 0x116   :  { %v637_v22 = vrot.slane %v636_v18, 4 }
 0x117   :  { %v567_v23 = vrot.slane %v566_v20, 2 }
 0x118   :  { %v638_v24 = vadd.f32 %v637_v22, %v636_v18 }
 0x119   :  { %v568_v26 = vadd.f32 %v567_v23, %v566_v20 }
 0x11a   :  { %v639_v43 = vrot.slane %v638_v24, 2 }
 0x11b   :  { %v569_v27 = vrot.slane %v568_v26, 1 }
 0x11c   :  { %v640_v19 = vadd.f32 %v639_v43, %v638_v24 }
 0x11d   :  { %v570_v28 = vadd.f32 %v569_v27, %v568_v26 }
 0x11e   :  { %v641_v14 = vrot.slane %v640_v19, 1 }
 0x11f   :  { %v571_v29 = vadd.f32 %v570_v28, %v533_v25 }
 0x120   :  { %v642_v30 = vadd.f32 %v641_v14, %v640_v19 }
 0x121   :  { %572 = vst [vmem:[%s1250_s4] sm:$0x1] %v571_v29 }
 0x122   :  { %v643_v52 = vadd.f32 %v642_v30, %v573_v21 }
 0x124   :  { %644 = vst [vmem:[%s1251_s5] sm:$0x1] %v643_v52 }

// kernel: model_c_forward.5
= control target key start
LH: loop header
LB: loop body
LE: loop exit
PB: predicated region body
PF: predicated region fallthrough
CT: control target
= control target key end

     0   :  { %s1907_s1 = inlined_call_operand.vmem [shape: bf16[128,128], index: 1, kind: input, shape index: {}]   ;;  %s1908_s0 = inlined_call_operand.vmem [shape: bf16[256,128], index: 0, kind: input, shape index: {}]   ;;  %s1909_s3 = inlined_call_operand.vmem [shape: bf16[128,128], index: 3, kind: input, shape index: {}]   ;;  %s1910_s2 = inlined_call_operand.vmem [shape: f32[1,128], index: 2, kind: input, shape index: {}]   ;;  %s1911_s4 = inlined_call_operand.vmem [shape: f32[1,128], index: 4, kind: input, shape index: {}]   ;;  %s1912_s5 = inlined_call_operand.vmem [shape: f32[256,128], index: 5, kind: output, shape index: {}]  }
   0x1   :  { %v1195_v0 = vld [vmem:[%s1907_s1 + $0x38] sm:$0xff]   ;;  %v1196_v1 = vld [vmem:[%s1907_s1 + $0x30] sm:$0xff]   ;;  %v1197_v2 = vld [vmem:[%s1907_s1 + $0x28] sm:$0xff]  }
   0x2   :  { %1099 = vmatprep.subr.bf16.mxu0 %v1195_v0  ;;  %v1198_v3 = vld [vmem:[%s1907_s1 + $0x20] sm:$0xff]   ;;  %v1199_v5 = vld [vmem:[%s1907_s1 + $0x18] sm:$0xff]   ;;  %v1200_v6 = vld [vmem:[%s1907_s1 + $0x10] sm:$0xff]  }
   0x3   :  { %1100 = vmatpush3.bf16.msra.mxu0 %v1195_v0  ;;  %v1203_v4 = vld [vmem:[%s1908_s0] sm:$0xff]   ;;  %v1201_v7 = vld [vmem:[%s1907_s1 + $0x8] sm:$0xff]   ;;  %v1219_v9 = vld [vmem:[%s1909_s3 + $0x38] sm:$0xff]  }
   0x4   :  { %1101 = vmatprep.subr.bf16.mxu0 %v1196_v1  ;;  %1115 = vmatprep.mubr.bf16.mxu0 %v1203_v4  ;;  %v1202_v8 = vld [vmem:[%s1907_s1] sm:$0xff]   ;;  %v1220_v10 = vld [vmem:[%s1909_s3 + $0x30] sm:$0xff]   ;;  %v1204_v11 = vld [vmem:[%s1908_s0 + $0x8] sm:$0xff]  }
   0x5   :  { %1147 = vmatprep.subr.bf16.mxu1 %v1219_v9  ;;  %v1221_v12 = vld [vmem:[%s1909_s3 + $0x28] sm:$0xff]   ;;  %v1205_v13 = vld [vmem:[%s1908_s0 + $0x10] sm:$0xff]   ;;  %v1222_v14 = vld [vmem:[%s1909_s3 + $0x20] sm:$0xff]  }
   0x6   :  { %1148 = vmatpush3.bf16.msra.mxu1 %v1219_v9  ;;  %v1223_v15 = vld [vmem:[%s1909_s3 + $0x18] sm:$0xff]   ;;  %v1207_v17 = vld [vmem:[%s1908_s0 + $0x20] sm:$0xff]   ;;  %v1208_v18 = vld [vmem:[%s1908_s0 + $0x28] sm:$0xff]  }
   0x7   :  { %1102 = vmatpush3.bf16.msra.mxu0 %v1196_v1  ;;  %1149 = vmatprep.subr.bf16.mxu1 %v1220_v10  ;;  %v1206_v16 = vld [vmem:[%s1908_s0 + $0x18] sm:$0xff]   ;;  %v1209_v19 = vld [vmem:[%s1908_s0 + $0x30] sm:$0xff]   ;;  %v1211_v21 = vld [vmem:[%s1908_s0 + $0x40] sm:$0xff]  }
   0x8   :  { %1103 = vmatprep.subr.bf16.mxu0 %v1197_v2  ;;  %v1210_v20 = vld [vmem:[%s1908_s0 + $0x38] sm:$0xff]   ;;  %v1212_v22 = vld [vmem:[%s1908_s0 + $0x48] sm:$0xff]   ;;  %v1213_v23 = vld [vmem:[%s1908_s0 + $0x50] sm:$0xff]  }
   0x9   :  { %v1214_v24 = vld [vmem:[%s1908_s0 + $0x58] sm:$0xff]   ;;  %v1215_v25 = vld [vmem:[%s1908_s0 + $0x60] sm:$0xff]   ;;  %v1216_v26 = vld [vmem:[%s1908_s0 + $0x68] sm:$0xff]  }
   0xa   :  { %1150 = vmatpush3.bf16.msra.mxu1 %v1220_v10  ;;  %v1217_v27 = vld [vmem:[%s1908_s0 + $0x70] sm:$0xff]   ;;  %v1218_v28 = vld [vmem:[%s1908_s0 + $0x78] sm:$0xff]   ;;  %v1225_v30 = vld [vmem:[%s1909_s3 + $0x8] sm:$0xff]  }
   0xb   :  { %1104 = vmatpush3.bf16.msra.mxu0 %v1197_v2  ;;  %1151 = vmatprep.subr.bf16.mxu1 %v1221_v12  ;;  %v1224_v29 = vld [vmem:[%s1909_s3 + $0x10] sm:$0xff]   ;;  %v1226_v31 = vld [vmem:[%s1909_s3] sm:$0xff]  }
   0xc   :  { %1105 = vmatprep.subr.bf16.mxu0 %v1198_v3  ;;  %v1484_v34 = vld [vmem:[%s1910_s2] ss:$0 sm:$0xff] }
   0xe   :  { %1152 = vmatpush3.bf16.msra.mxu1 %v1221_v12 }
   0xf   :  { %1106 = vmatpush3.bf16.msra.mxu0 %v1198_v3  ;;  %1153 = vmatprep.subr.bf16.mxu1 %v1222_v14 }
  0x10   :  { %1107 = vmatprep.subr.bf16.mxu0 %v1199_v5 }
  0x12   :  { %1154 = vmatpush3.bf16.msra.mxu1 %v1222_v14 }
  0x13   :  { %1108 = vmatpush3.bf16.msra.mxu0 %v1199_v5  ;;  %1155 = vmatprep.subr.bf16.mxu1 %v1223_v15 }
  0x14   :  { %1109 = vmatprep.subr.bf16.mxu0 %v1200_v6 }
  0x16   :  { %1156 = vmatpush3.bf16.msra.mxu1 %v1223_v15 }
  0x17   :  { %1110 = vmatpush3.bf16.msra.mxu0 %v1200_v6  ;;  %1157 = vmatprep.subr.bf16.mxu1 %v1224_v29 }
  0x18   :  { %1111 = vmatprep.subr.bf16.mxu0 %v1201_v7 }
  0x1a   :  { %1158 = vmatpush3.bf16.msra.mxu1 %v1224_v29 }
  0x1b   :  { %1112 = vmatpush3.bf16.msra.mxu0 %v1201_v7  ;;  %1159 = vmatprep.subr.bf16.mxu1 %v1225_v30 }
  0x1c   :  { %1113 = vmatprep.subr.bf16.mxu0 %v1202_v8 }
  0x1e   :  { %1160 = vmatpush3.bf16.msra.mxu1 %v1225_v30 }
  0x1f   :  { %1114 = vmatpush3.bf16.msra.mxu0 %v1202_v8  ;;  %1161 = vmatprep.subr.bf16.mxu1 %v1226_v31 }
  0x22   :  { %1116 = vmatmul.mubr.bf16.vlgmr.msra.gmra.mxu0 %v1204_v11  ;;  %1162 = vmatpush3.bf16.msra.mxu1 %v1226_v31 }
  0x23   :  { %1119 = vmatprep.mubr.bf16.mxu0 %v1205_v13 }
  0x2a   :  { %1120 = vmatmul.mubr.bf16.gmra.mxu0 %v1206_v16 }
  0x2b   :  { %1123 = vmatprep.mubr.bf16.mxu0 %v1207_v17 }
  0x32   :  { %1124 = vmatmul.mubr.bf16.gmra.mxu0 %v1208_v18 }
  0x33   :  { %1127 = vmatprep.mubr.bf16.mxu0 %v1209_v19 }
  0x3a   :  { %1128 = vmatmul.mubr.bf16.gmra.mxu0 %v1210_v20 }
  0x3b   :  { %1131 = vmatprep.mubr.bf16.mxu0 %v1211_v21 }
  0x42   :  { %1132 = vmatmul.mubr.bf16.gmra.mxu0 %v1212_v22 }
  0x43   :  { %1135 = vmatprep.mubr.bf16.mxu0 %v1213_v23 }
  0x4a   :  { %1136 = vmatmul.mubr.bf16.gmra.mxu0 %v1214_v24 }
  0x4b   :  { %1139 = vmatprep.mubr.bf16.mxu0 %v1215_v25 }
  0x52   :  { %1140 = vmatmul.mubr.bf16.gmra.mxu0 %v1216_v26 }
  0x53   :  { %1143 = vmatprep.mubr.bf16.mxu0 %v1217_v27 }
  0x5a   :  { %1144 = vmatmul.mubr.bf16.gmra.mxu0 %v1218_v28 }
  0xe2   :  { %v1117_v32 = vpop.f32.mrf.mxu0 }
  0xe3   :  { %v263_v38 = vadd.f32 %v1117_v32, %v1484_v34 }
  0xe4   :  { %v254_v33 = vpop.f32.mrf.mxu0 }
  0xe5   :  { %v255_v36 = vadd.f32 %v1484_v34, %v254_v33  ;;  %v383_v45 = vmax.f32 %v263_v38, 0.0 }
  0xe6   :  { %v1118_v35 = vpop.f32.mrf.mxu0 }
  0xe7   :  { %v266_v37 = vadd.f32 %v1118_v35, %v1484_v34  ;;  %v381_v43 = vmax.f32 %v255_v36, 0.0 }
  0xe8   :  { %v257_v39 = vpop.f32.mrf.mxu0 }
  0xe9   :  { %v258_v40 = vadd.f32 %v1484_v34, %v257_v39  ;;  %v384_v41 = vmax.f32 %v266_v37, 0.0 }
  0xea   :  { %v1121_v42 = vpop.f32.mrf.mxu0 }
  0xeb   :  { %v382_v44 = vmax.f32 %v258_v40, 0.0  ;;  %v414_v48 = vpack.c.bf16 %v384_v41, %v383_v45  ;;  %v279_v52 = vadd.f32 %v1121_v42, %v1484_v34 }
  0xec   :  { %v270_v46 = vpop.f32.mrf.mxu0 }
  0xed   :  { %v413_v47 = vpack.c.bf16 %v382_v44, %v381_v43  ;;  %v271_v50 = vadd.f32 %v1484_v34, %v270_v46  ;;  %v387_v59 = vmax.f32 %v279_v52, 0.0 }
  0xee   :  { %v1122_v49 = vpop.f32.mrf.mxu0 }
  0xef   :  { %v282_v51 = vadd.f32 %v1122_v49, %v1484_v34  ;;  %1163 = vmatprep.mubr.bf16.mxu1 %v413_v47  ;;  %v385_v57 = vmax.f32 %v271_v50, 0.0 }
  0xf0   :  { %v273_v53 = vpop.f32.mrf.mxu0  ;;  %1164 = vmatmul.mubr.bf16.vlgmr.msra.gmra.mxu1 %v414_v48 }
  0xf1   :  { %v274_v54 = vadd.f32 %v1484_v34, %v273_v53  ;;  %v388_v55 = vmax.f32 %v282_v51, 0.0 }
  0xf2   :  { %v1125_v56 = vpop.f32.mrf.mxu0 }
  0xf3   :  { %v386_v58 = vmax.f32 %v274_v54, 0.0  ;;  %v416_v62 = vpack.c.bf16 %v388_v55, %v387_v59  ;;  %v295_v2 = vadd.f32 %v1125_v56, %v1484_v34 }
  0xf4   :  { %v286_v60 = vpop.f32.mrf.mxu0 }
  0xf5   :  { %v415_v61 = vpack.c.bf16 %v386_v58, %v385_v57  ;;  %v287_v0 = vadd.f32 %v1484_v34, %v286_v60  ;;  %v391_v9 = vmax.f32 %v295_v2, 0.0 }
  0xf6   :  { %v1126_v63 = vpop.f32.mrf.mxu0 }
  0xf7   :  { %v298_v1 = vadd.f32 %v1126_v63, %v1484_v34  ;;  %1167 = vmatprep.mubr.bf16.mxu1 %v415_v61  ;;  %v389_v7 = vmax.f32 %v287_v0, 0.0 }
  0xf8   :  { %v289_v3 = vpop.f32.mrf.mxu0  ;;  %1168 = vmatmul.mubr.bf16.gmra.mxu1 %v416_v62 }
  0xf9   :  { %v290_v4 = vadd.f32 %v1484_v34, %v289_v3  ;;  %v392_v5 = vmax.f32 %v298_v1, 0.0 }
  0xfa   :  { %v1129_v6 = vpop.f32.mrf.mxu0 }
  0xfb   :  { %v390_v8 = vmax.f32 %v290_v4, 0.0  ;;  %v418_v12 = vpack.c.bf16 %v392_v5, %v391_v9  ;;  %v311_v16 = vadd.f32 %v1129_v6, %v1484_v34 }
  0xfc   :  { %v302_v10 = vpop.f32.mrf.mxu0 }
  0xfd   :  { %v417_v11 = vpack.c.bf16 %v390_v8, %v389_v7  ;;  %v303_v14 = vadd.f32 %v1484_v34, %v302_v10  ;;  %v395_v23 = vmax.f32 %v311_v16, 0.0 }
  0xfe   :  { %v1130_v13 = vpop.f32.mrf.mxu0 }
  0xff   :  { %v314_v15 = vadd.f32 %v1130_v13, %v1484_v34  ;;  %1171 = vmatprep.mubr.bf16.mxu1 %v417_v11  ;;  %v393_v21 = vmax.f32 %v303_v14, 0.0 }
 0x100   :  { %v305_v17 = vpop.f32.mrf.mxu0  ;;  %1172 = vmatmul.mubr.bf16.gmra.mxu1 %v418_v12 }
 0x101   :  { %v306_v18 = vadd.f32 %v1484_v34, %v305_v17  ;;  %v396_v19 = vmax.f32 %v314_v15, 0.0 }
 0x102   :  { %v1133_v20 = vpop.f32.mrf.mxu0 }
 0x103   :  { %v394_v22 = vmax.f32 %v306_v18, 0.0  ;;  %v420_v26 = vpack.c.bf16 %v396_v19, %v395_v23  ;;  %v327_v30 = vadd.f32 %v1133_v20, %v1484_v34  ;;  %v1521_v18 = vld [vmem:[%s1911_s4] ss:$0 sm:$0xff] }
 0x104   :  { %v318_v24 = vpop.f32.mrf.mxu0 }
 0x105   :  { %v419_v25 = vpack.c.bf16 %v394_v22, %v393_v21  ;;  %v319_v28 = vadd.f32 %v1484_v34, %v318_v24  ;;  %v399_v38 = vmax.f32 %v327_v30, 0.0 }
 0x106   :  { %v1134_v27 = vpop.f32.mrf.mxu0 }
 0x107   :  { %v330_v29 = vadd.f32 %v1134_v27, %v1484_v34  ;;  %1175 = vmatprep.mubr.bf16.mxu1 %v419_v25  ;;  %v397_v36 = vmax.f32 %v319_v28, 0.0 }
 0x108   :  { %v321_v31 = vpop.f32.mrf.mxu0  ;;  %1176 = vmatmul.mubr.bf16.gmra.mxu1 %v420_v26 }
 0x109   :  { %v322_v32 = vadd.f32 %v1484_v34, %v321_v31  ;;  %v400_v33 = vmax.f32 %v330_v29, 0.0 }
 0x10a   :  { %v1137_v35 = vpop.f32.mrf.mxu0 }
 0x10b   :  { %v398_v37 = vmax.f32 %v322_v32, 0.0  ;;  %v422_v41 = vpack.c.bf16 %v400_v33, %v399_v38  ;;  %v343_v45 = vadd.f32 %v1137_v35, %v1484_v34 }
 0x10c   :  { %v334_v39 = vpop.f32.mrf.mxu0 }
 0x10d   :  { %v421_v40 = vpack.c.bf16 %v398_v37, %v397_v36  ;;  %v335_v43 = vadd.f32 %v1484_v34, %v334_v39  ;;  %v403_v52 = vmax.f32 %v343_v45, 0.0 }
 0x10e   :  { %v1138_v42 = vpop.f32.mrf.mxu0 }
 0x10f   :  { %v346_v44 = vadd.f32 %v1138_v42, %v1484_v34  ;;  %1179 = vmatprep.mubr.bf16.mxu1 %v421_v40  ;;  %v401_v50 = vmax.f32 %v335_v43, 0.0 }
 0x110   :  { %v337_v46 = vpop.f32.mrf.mxu0  ;;  %1180 = vmatmul.mubr.bf16.gmra.mxu1 %v422_v41 }
 0x111   :  { %v338_v47 = vadd.f32 %v1484_v34, %v337_v46  ;;  %v404_v48 = vmax.f32 %v346_v44, 0.0 }
 0x112   :  { %v1141_v49 = vpop.f32.mrf.mxu0 }
 0x113   :  { %v402_v51 = vmax.f32 %v338_v47, 0.0  ;;  %v424_v55 = vpack.c.bf16 %v404_v48, %v403_v52  ;;  %v359_v59 = vadd.f32 %v1141_v49, %v1484_v34 }
 0x114   :  { %v350_v53 = vpop.f32.mrf.mxu0 }
 0x115   :  { %v423_v54 = vpack.c.bf16 %v402_v51, %v401_v50  ;;  %v351_v57 = vadd.f32 %v1484_v34, %v350_v53  ;;  %v407_v2 = vmax.f32 %v359_v59, 0.0 }
 0x116   :  { %v1142_v56 = vpop.f32.mrf.mxu0 }
 0x117   :  { %v362_v58 = vadd.f32 %v1142_v56, %v1484_v34  ;;  %1183 = vmatprep.mubr.bf16.mxu1 %v423_v54  ;;  %v405_v0 = vmax.f32 %v351_v57, 0.0 }
 0x118   :  { %v353_v60 = vpop.f32.mrf.mxu0  ;;  %1184 = vmatmul.mubr.bf16.gmra.mxu1 %v424_v55 }
 0x119   :  { %v354_v61 = vadd.f32 %v1484_v34, %v353_v60  ;;  %v408_v62 = vmax.f32 %v362_v58, 0.0 }
 0x11a   :  { %v1145_v63 = vpop.f32.mrf.mxu0 }
 0x11b   :  { %v406_v1 = vmax.f32 %v354_v61, 0.0  ;;  %v426_v5 = vpack.c.bf16 %v408_v62, %v407_v2  ;;  %v375_v9 = vadd.f32 %v1145_v63, %v1484_v34 }
 0x11c   :  { %v366_v3 = vpop.f32.mrf.mxu0 }
 0x11d   :  { %v425_v4 = vpack.c.bf16 %v406_v1, %v405_v0  ;;  %v367_v7 = vadd.f32 %v1484_v34, %v366_v3  ;;  %v411_v15 = vmax.f32 %v375_v9, 0.0 }
 0x11e   :  { %v1146_v6 = vpop.f32.mrf.mxu0 }
 0x11f   :  { %v378_v8 = vadd.f32 %v1146_v6, %v1484_v34  ;;  %1187 = vmatprep.mubr.bf16.mxu1 %v425_v4  ;;  %v409_v13 = vmax.f32 %v367_v7, 0.0 }
 0x120   :  { %v369_v10 = vpop.f32.mrf.mxu0  ;;  %1188 = vmatmul.mubr.bf16.gmra.mxu1 %v426_v5 }
 0x121   :  { %v370_v11 = vadd.f32 %v1484_v34, %v369_v10  ;;  %v412_v12 = vmax.f32 %v378_v8, 0.0 }
 0x123   :  { %v410_v14 = vmax.f32 %v370_v11, 0.0  ;;  %v428_v17 = vpack.c.bf16 %v412_v12, %v411_v15 }
 0x125   :  { %v427_v16 = vpack.c.bf16 %v410_v14, %v409_v13 }
 0x127   :  { %1191 = vmatprep.mubr.bf16.mxu1 %v427_v16 }
 0x128   :  { %1192 = vmatmul.mubr.bf16.gmra.mxu1 %v428_v17 }
 0x1b0   :  { %v1165_v19 = vpop.f32.mrf.mxu1 }
 0x1b1   :  { %v1524_v20 = vadd.f32 %v1165_v19, %v1521_v18 }
 0x1b2   :  { %v534_v21 = vpop.f32.mrf.mxu1 }
 0x1b3   :  { %v1527_v34 = vadd.f32 %v1521_v18, %v534_v21  ;;  %665 = vmax.xlane.f32.xlu1 %v1524_v20 }
 0x1b4   :  { %v1166_v22 = vpop.f32.mrf.mxu1 }
 0x1b5   :  { %v1531_v23 = vadd.f32 %v1166_v22, %v1521_v18  ;;  %661 = vmax.xlane.f32.xlu0 %v1527_v34 }
 0x1b6   :  { %v537_v24 = vpop.f32.mrf.mxu1 }
 0x1b7   :  { %v1535_v25 = vadd.f32 %v1521_v18, %v537_v24  ;;  %667 = vmax.xlane.f32.xlu1 %v1531_v23 }
 0x1b8   :  { %v1169_v26 = vpop.f32.mrf.mxu1 }
 0x1b9   :  { %663 = vmax.xlane.f32.xlu0 %v1535_v25  ;;  %v1540_v28 = vadd.f32 %v1169_v26, %v1521_v18 }
 0x1ba   :  { %v550_v27 = vpop.f32.mrf.mxu1 }
 0x1bb   :  { %v1547_v32 = vadd.f32 %v1521_v18, %v550_v27 }
 0x1bc   :  { %v1170_v29 = vpop.f32.mrf.mxu1 }
 0x1bd   :  { %v1543_v30 = vadd.f32 %v1170_v29, %v1521_v18  ;;  %673 = vmax.xlane.f32.xlu0 %v1540_v28 }
 0x1be   :  { %v553_v31 = vpop.f32.mrf.mxu1 }
 0x1bf   :  { %675 = vmax.xlane.f32.xlu1 %v1543_v30  ;;  %v1551_v35 = vadd.f32 %v1521_v18, %v553_v31 }
 0x1c0   :  { %v1173_v33 = vpop.f32.mrf.mxu1 }
 0x1c1   :  { %669 = vmax.xlane.f32.xlu0 %v1547_v32  ;;  %v1555_v37 = vadd.f32 %v1173_v33, %v1521_v18 }
 0x1c2   :  { %v566_v36 = vpop.f32.mrf.mxu1 }
 0x1c3   :  { %671 = vmax.xlane.f32.xlu1 %v1551_v35  ;;  %v1563_v41 = vadd.f32 %v1521_v18, %v566_v36 }
 0x1c4   :  { %v1174_v38 = vpop.f32.mrf.mxu1 }
 0x1c5   :  { %v1559_v39 = vadd.f32 %v1174_v38, %v1521_v18  ;;  %681 = vmax.xlane.f32.xlu0 %v1555_v37 }
 0x1c6   :  { %v569_v40 = vpop.f32.mrf.mxu1 }
 0x1c7   :  { %683 = vmax.xlane.f32.xlu1 %v1559_v39  ;;  %v1567_v43 = vadd.f32 %v1521_v18, %v569_v40 }
 0x1c8   :  { %v1177_v42 = vpop.f32.mrf.mxu1 }
 0x1c9   :  { %677 = vmax.xlane.f32.xlu0 %v1563_v41  ;;  %v1571_v45 = vadd.f32 %v1177_v42, %v1521_v18 }
 0x1ca   :  { %v582_v44 = vpop.f32.mrf.mxu1 }
 0x1cb   :  { %679 = vmax.xlane.f32.xlu1 %v1567_v43  ;;  %v1579_v49 = vadd.f32 %v1521_v18, %v582_v44 }
 0x1cc   :  { %v1178_v46 = vpop.f32.mrf.mxu1 }
 0x1cd   :  { %v1575_v47 = vadd.f32 %v1178_v46, %v1521_v18  ;;  %689 = vmax.xlane.f32.xlu0 %v1571_v45 }
 0x1ce   :  { %v585_v48 = vpop.f32.mrf.mxu1 }
 0x1cf   :  { %691 = vmax.xlane.f32.xlu1 %v1575_v47  ;;  %v1583_v51 = vadd.f32 %v1521_v18, %v585_v48 }
 0x1d0   :  { %v1181_v50 = vpop.f32.mrf.mxu1 }
 0x1d1   :  { %685 = vmax.xlane.f32.xlu0 %v1579_v49  ;;  %v1587_v53 = vadd.f32 %v1181_v50, %v1521_v18 }
 0x1d2   :  { %v598_v52 = vpop.f32.mrf.mxu1 }
 0x1d3   :  { %687 = vmax.xlane.f32.xlu1 %v1583_v51  ;;  %v1595_v57 = vadd.f32 %v1521_v18, %v598_v52 }
 0x1d4   :  { %v1182_v54 = vpop.f32.mrf.mxu1 }
 0x1d5   :  { %v1591_v55 = vadd.f32 %v1182_v54, %v1521_v18  ;;  %697 = vmax.xlane.f32.xlu0 %v1587_v53 }
 0x1d6   :  { %v601_v56 = vpop.f32.mrf.mxu1 }
 0x1d7   :  { %699 = vmax.xlane.f32.xlu1 %v1591_v55  ;;  %v1599_v59 = vadd.f32 %v1521_v18, %v601_v56 }
 0x1d8   :  { %v1185_v58 = vpop.f32.mrf.mxu1 }
 0x1d9   :  { %693 = vmax.xlane.f32.xlu0 %v1595_v57  ;;  %v1603_v61 = vadd.f32 %v1185_v58, %v1521_v18 }
 0x1da   :  { %v614_v60 = vpop.f32.mrf.mxu1 }
 0x1db   :  { %695 = vmax.xlane.f32.xlu1 %v1599_v59  ;;  %v1611_v1 = vadd.f32 %v1521_v18, %v614_v60 }
 0x1dc   :  { %v1186_v62 = vpop.f32.mrf.mxu1 }
 0x1dd   :  { %v1607_v63 = vadd.f32 %v1186_v62, %v1521_v18  ;;  %705 = vmax.xlane.f32.xlu0 %v1603_v61 }
 0x1de   :  { %v617_v0 = vpop.f32.mrf.mxu1 }
 0x1df   :  { %707 = vmax.xlane.f32.xlu1 %v1607_v63  ;;  %v1615_v3 = vadd.f32 %v1521_v18, %v617_v0 }
 0x1e0   :  { %v1189_v2 = vpop.f32.mrf.mxu1 }
 0x1e1   :  { %701 = vmax.xlane.f32.xlu0 %v1611_v1  ;;  %v1619_v5 = vadd.f32 %v1189_v2, %v1521_v18 }
 0x1e2   :  { %v630_v4 = vpop.f32.mrf.mxu1 }
 0x1e3   :  { %703 = vmax.xlane.f32.xlu1 %v1615_v3  ;;  %v1627_v9 = vadd.f32 %v1521_v18, %v630_v4 }
 0x1e4   :  { %v1190_v6 = vpop.f32.mrf.mxu1 }
 0x1e5   :  { %v1623_v7 = vadd.f32 %v1190_v6, %v1521_v18  ;;  %713 = vmax.xlane.f32.xlu0 %v1619_v5 }
 0x1e6   :  { %v633_v8 = vpop.f32.mrf.mxu1 }
 0x1e7   :  { %715 = vmax.xlane.f32.xlu1 %v1623_v7  ;;  %v1631_v11 = vadd.f32 %v1521_v18, %v633_v8 }
 0x1e8   :  { %v1193_v10 = vpop.f32.mrf.mxu1 }
 0x1e9   :  { %709 = vmax.xlane.f32.xlu0 %v1627_v9  ;;  %v1640_v16 = vadd.f32 %v1193_v10, %v1521_v18 }
 0x1ea   :  { %v646_v12 = vpop.f32.mrf.mxu1 }
 0x1eb   :  { %v1635_v13 = vadd.f32 %v1521_v18, %v646_v12  ;;  %711 = vmax.xlane.f32.xlu1 %v1631_v11 }
 0x1ec   :  { %v1194_v14 = vpop.f32.mrf.mxu1 }
 0x1ed   :  { %717 = vmax.xlane.f32.xlu0 %v1635_v13  ;;  %v1648_v19 = vadd.f32 %v1194_v14, %v1521_v18 }
 0x1ee   :  { %v649_v15 = vpop.f32.mrf.mxu1 }
 0x1ef   :  { %v1643_v17 = vadd.f32 %v1521_v18, %v649_v15 }
 0x1f1   :  { %719 = vmax.xlane.f32.xlu1 %v1643_v17  ;;  %721 = vmax.xlane.f32.xlu0 %v1640_v16 }
 0x1f5   :  { %723 = vmax.xlane.f32.xlu1 %v1648_v19 }
 0x23c   :  { %v666_v21 = vpop.xlane.xlu1 %665 }
 0x23d   :  { %v1652_v22 = vsub.f32 %v1524_v20, %v666_v21 }
 0x23e   :  { %v662_v24 = vpop.xlane.xlu0 %661 }
 0x23f   :  { %v761_v26 = vmul.f32 1.442695, %v1652_v22  ;;  %v1656_v27 = vsub.f32 %v1527_v34, %v662_v24 }
 0x240   :  { %v668_v29 = vpop.xlane.xlu1 %667 }
 0x241   :  { %1227 = vpow2.f32 %v761_v26  ;;  %v757_v31 = vmul.f32 1.442695, %v1656_v27  ;;  %v1660_v33 = vsub.f32 %v1531_v23, %v668_v29 }
 0x242   :  { %v664_v18 = vpop.xlane.xlu0 %663 }
 0x243   :  { %v763_v36 = vmul.f32 1.442695, %v1660_v33  ;;  %v1664_v38 = vsub.f32 %v1535_v25, %v664_v18  ;;  %1229 = vpow2.f32 %v757_v31 }
 0x245   :  { %1231 = vpow2.f32 %v763_v36  ;;  %v759_v20 = vmul.f32 1.442695, %v1664_v38 }
 0x246   :  { %v674_v40 = vpop.xlane.xlu0 %673 }
 0x247   :  { %v1668_v34 = vsub.f32 %v1540_v28, %v674_v40  ;;  %1233 = vpow2.f32 %v759_v20 }
 0x248   :  { %v676_v42 = vpop.xlane.xlu1 %675 }
 0x249   :  { %v769_v44 = vmul.f32 1.442695, %v1668_v34  ;;  %v1672_v23 = vsub.f32 %v1543_v30, %v676_v42 }
 0x24a   :  { %v670_v46 = vpop.xlane.xlu0 %669 }
 0x24b   :  { %1235 = vpow2.f32 %v769_v44  ;;  %v771_v25 = vmul.f32 1.442695, %v1672_v23  ;;  %v1676_v48 = vsub.f32 %v1547_v32, %v670_v46 }
 0x24c   :  { %v672_v50 = vpop.xlane.xlu1 %671 }
 0x24d   :  { %1237 = vpow2.f32 %v771_v25  ;;  %v765_v52 = vmul.f32 1.442695, %v1676_v48  ;;  %v1680_v28 = vsub.f32 %v1551_v35, %v672_v50 }
 0x24e   :  { %v1228_v54 = vpop.eup %1227  ;;  %v682_v56 = vpop.xlane.xlu0 %681 }
 0x24f   :  { %1239 = vpow2.f32 %v765_v52  ;;  %v767_v30 = vmul.f32 1.442695, %v1680_v28  ;;  %v1684_v58 = vsub.f32 %v1555_v37, %v682_v56  ;;  %825 = vadd.xlane.f32.xlu0 %v1228_v54 }
 0x250   :  { %v684_v60 = vpop.xlane.xlu1 %683  ;;  %v1230_v62 = vpop.eup %1229 }
 0x251   :  { %1241 = vpow2.f32 %v767_v30  ;;  %v777_v32 = vmul.f32 1.442695, %v1684_v58  ;;  %v1688_v0 = vsub.f32 %v1559_v39, %v684_v60 }
 0x252   :  { %v1232_v2 = vpop.eup %1231  ;;  %v678_v35 = vpop.xlane.xlu0 %677 }
 0x253   :  { %1243 = vpow2.f32 %v777_v32  ;;  %v779_v4 = vmul.f32 1.442695, %v1688_v0  ;;  %v1692_v6 = vsub.f32 %v1563_v41, %v678_v35  ;;  %827 = vadd.xlane.f32.xlu1 %v1232_v2  ;;  %821 = vadd.xlane.f32.xlu0 %v1230_v62 }
 0x254   :  { %v680_v37 = vpop.xlane.xlu1 %679  ;;  %v1234_v12 = vpop.eup %1233 }
 0x255   :  { %1245 = vpow2.f32 %v779_v4  ;;  %v773_v8 = vmul.f32 1.442695, %v1692_v6  ;;  %v1696_v10 = vsub.f32 %v1567_v43, %v680_v37 }
 0x256   :  { %v690_v39 = vpop.xlane.xlu0 %689 }
 0x257   :  { %1247 = vpow2.f32 %v773_v8  ;;  %v775_v14 = vmul.f32 1.442695, %v1696_v10  ;;  %v1700_v15 = vsub.f32 %v1571_v45, %v690_v39  ;;  %823 = vadd.xlane.f32.xlu1 %v1234_v12 }
 0x258   :  { %v1236_v41 = vpop.eup %1235  ;;  %v692_v21 = vpop.xlane.xlu1 %691 }
 0x259   :  { %1249 = vpow2.f32 %v775_v14  ;;  %v785_v24 = vmul.f32 1.442695, %v1700_v15  ;;  %v1704_v26 = vsub.f32 %v1575_v47, %v692_v21  ;;  %833 = vadd.xlane.f32.xlu0 %v1236_v41 }
 0x25a   :  { %v1238_v43 = vpop.eup %1237  ;;  %v686_v29 = vpop.xlane.xlu0 %685 }
 0x25b   :  { %1251 = vpow2.f32 %v785_v24  ;;  %v787_v31 = vmul.f32 1.442695, %v1704_v26  ;;  %v1708_v18 = vsub.f32 %v1579_v49, %v686_v29  ;;  %835 = vadd.xlane.f32.xlu1 %v1238_v43 }
 0x25c   :  { %v1240_v45 = vpop.eup %1239  ;;  %v688_v36 = vpop.xlane.xlu1 %687 }
 0x25d   :  { %1253 = vpow2.f32 %v787_v31  ;;  %v781_v20 = vmul.f32 1.442695, %v1708_v18  ;;  %v1712_v40 = vsub.f32 %v1583_v51, %v688_v36  ;;  %829 = vadd.xlane.f32.xlu0 %v1240_v45 }
 0x25e   :  { %v1242_v47 = vpop.eup %1241  ;;  %v698_v42 = vpop.xlane.xlu0 %697 }
 0x25f   :  { %1255 = vpow2.f32 %v781_v20  ;;  %v783_v44 = vmul.f32 1.442695, %v1712_v40  ;;  %v1716_v46 = vsub.f32 %v1587_v53, %v698_v42  ;;  %831 = vadd.xlane.f32.xlu1 %v1242_v47 }
 0x260   :  { %v1244_v49 = vpop.eup %1243  ;;  %v700_v25 = vpop.xlane.xlu1 %699 }
 0x261   :  { %1257 = vpow2.f32 %v783_v44  ;;  %v793_v50 = vmul.f32 1.442695, %v1716_v46  ;;  %v1720_v52 = vsub.f32 %v1591_v55, %v700_v25  ;;  %841 = vadd.xlane.f32.xlu0 %v1244_v49 }
 0x262   :  { %v1246_v51 = vpop.eup %1245  ;;  %v694_v54 = vpop.xlane.xlu0 %693 }
 0x263   :  { %1259 = vpow2.f32 %v793_v50  ;;  %v795_v56 = vmul.f32 1.442695, %v1720_v52  ;;  %v1724_v30 = vsub.f32 %v1595_v57, %v694_v54  ;;  %843 = vadd.xlane.f32.xlu1 %v1246_v51 }
 0x264   :  { %v1248_v53 = vpop.eup %1247  ;;  %v696_v60 = vpop.xlane.xlu1 %695 }
 0x265   :  { %1261 = vpow2.f32 %v795_v56  ;;  %v789_v62 = vmul.f32 1.442695, %v1724_v30  ;;  %v1728_v32 = vsub.f32 %v1599_v59, %v696_v60  ;;  %837 = vadd.xlane.f32.xlu0 %v1248_v53 }
 0x266   :  { %v1250_v55 = vpop.eup %1249  ;;  %v706_v2 = vpop.xlane.xlu0 %705 }
 0x267   :  { %1263 = vpow2.f32 %v789_v62  ;;  %v791_v35 = vmul.f32 1.442695, %v1728_v32  ;;  %v1732_v4 = vsub.f32 %v1603_v61, %v706_v2  ;;  %839 = vadd.xlane.f32.xlu1 %v1250_v55 }
 0x268   :  { %v1252_v57 = vpop.eup %1251  ;;  %v708_v37 = vpop.xlane.xlu1 %707 }
 0x269   :  { %1265 = vpow2.f32 %v791_v35  ;;  %v801_v8 = vmul.f32 1.442695, %v1732_v4  ;;  %v1736_v12 = vsub.f32 %v1607_v63, %v708_v37  ;;  %849 = vadd.xlane.f32.xlu0 %v1252_v57 }
 0x26a   :  { %v1254_v59 = vpop.eup %1253  ;;  %v702_v39 = vpop.xlane.xlu0 %701 }
 0x26b   :  { %1267 = vpow2.f32 %v801_v8  ;;  %v803_v14 = vmul.f32 1.442695, %v1736_v12  ;;  %v1740_v41 = vsub.f32 %v1611_v1, %v702_v39  ;;  %851 = vadd.xlane.f32.xlu1 %v1254_v59 }
 0x26c   :  { %v1256_v61 = vpop.eup %1255  ;;  %v704_v21 = vpop.xlane.xlu1 %703 }
 0x26d   :  { %1269 = vpow2.f32 %v803_v14  ;;  %v797_v24 = vmul.f32 1.442695, %v1740_v41  ;;  %v1744_v43 = vsub.f32 %v1615_v3, %v704_v21  ;;  %845 = vadd.xlane.f32.xlu0 %v1256_v61 }
 0x26e   :  { %v1258_v63 = vpop.eup %1257  ;;  %v714_v29 = vpop.xlane.xlu0 %713 }
 0x26f   :  { %1271 = vpow2.f32 %v797_v24  ;;  %v799_v31 = vmul.f32 1.442695, %v1744_v43  ;;  %v1748_v45 = vsub.f32 %v1619_v5, %v714_v29  ;;  %847 = vadd.xlane.f32.xlu1 %v1258_v63 }
 0x270   :  { %v1260_v1 = vpop.eup %1259  ;;  %v716_v36 = vpop.xlane.xlu1 %715 }
 0x271   :  { %1273 = vpow2.f32 %v799_v31  ;;  %v809_v20 = vmul.f32 1.442695, %v1748_v45  ;;  %v1752_v47 = vsub.f32 %v1623_v7, %v716_v36  ;;  %857 = vadd.xlane.f32.xlu0 %v1260_v1 }
 0x272   :  { %v1262_v3 = vpop.eup %1261  ;;  %v710_v42 = vpop.xlane.xlu0 %709 }
 0x273   :  { %1275 = vpow2.f32 %v809_v20  ;;  %v811_v44 = vmul.f32 1.442695, %v1752_v47  ;;  %v1756_v49 = vsub.f32 %v1627_v9, %v710_v42  ;;  %859 = vadd.xlane.f32.xlu1 %v1262_v3 }
 0x274   :  { %v1264_v5 = vpop.eup %1263  ;;  %v712_v25 = vpop.xlane.xlu1 %711 }
 0x275   :  { %1277 = vpow2.f32 %v811_v44  ;;  %v805_v50 = vmul.f32 1.442695, %v1756_v49  ;;  %v1760_v51 = vsub.f32 %v1631_v11, %v712_v25  ;;  %853 = vadd.xlane.f32.xlu0 %v1264_v5 }
 0x276   :  { %v1266_v7 = vpop.eup %1265  ;;  %v718_v54 = vpop.xlane.xlu0 %717 }
 0x277   :  { %1279 = vpow2.f32 %v805_v50  ;;  %v807_v56 = vmul.f32 1.442695, %v1760_v51  ;;  %v1764_v53 = vsub.f32 %v1635_v13, %v718_v54  ;;  %855 = vadd.xlane.f32.xlu1 %v1266_v7 }
 0x278   :  { %v1268_v9 = vpop.eup %1267 }
 0x279   :  { %1281 = vpow2.f32 %v807_v56  ;;  %v813_v60 = vmul.f32 1.442695, %v1764_v53  ;;  %865 = vadd.xlane.f32.xlu0 %v1268_v9 }
 0x27a   :  { %v1270_v62 = vpop.eup %1269  ;;  %v720_v55 = vpop.xlane.xlu1 %719 }
 0x27b   :  { %v722_v2 = vpop.xlane.xlu0 %721  ;;  %1283 = vpow2.f32 %v813_v60  ;;  %v1768_v11 = vsub.f32 %v1643_v17, %v720_v55  ;;  %867 = vadd.xlane.f32.xlu1 %v1270_v62 }
 0x27c   :  { %v1771_v35 = vsub.f32 %v1640_v16, %v722_v2  ;;  %v1272_v57 = vpop.eup %1271 }
 0x27d   :  { %v815_v13 = vmul.f32 1.442695, %v1768_v11  ;;  %861 = vadd.xlane.f32.xlu0 %v1272_v57 }
 0x27e   :  { %v817_v37 = vmul.f32 1.442695, %v1771_v35  ;;  %v1274_v8 = vpop.eup %1273  ;;  %v724_v59 = vpop.xlane.xlu1 %723 }
 0x27f   :  { %1285 = vpow2.f32 %v815_v13  ;;  %v1776_v39 = vsub.f32 %v1648_v19, %v724_v59  ;;  %863 = vadd.xlane.f32.xlu1 %v1274_v8 }
 0x280   :  { %v1276_v14 = vpop.eup %1275  ;;  %1287 = vpow2.f32 %v817_v37 }
 0x281   :  { %v819_v17 = vmul.f32 1.442695, %v1776_v39  ;;  %873 = vadd.xlane.f32.xlu0 %v1276_v14 }
 0x282   :  { %v1278_v16 = vpop.eup %1277 }
 0x283   :  { %1289 = vpow2.f32 %v819_v17  ;;  %875 = vadd.xlane.f32.xlu1 %v1278_v16 }
 0x284   :  { %v1280_v61 = vpop.eup %1279 }
 0x285   :  { %869 = vadd.xlane.f32.xlu0 %v1280_v61 }
 0x286   :  { %v1282_v21 = vpop.eup %1281 }
 0x287   :  { %871 = vadd.xlane.f32.xlu1 %v1282_v21 }
 0x288   :  { %v1284_v24 = vpop.eup %1283 }
 0x289   :  { %877 = vadd.xlane.f32.xlu0 %v1284_v24 }
 0x28c   :  { %v1286_v63 = vpop.eup %1285 }
 0x28d   :  { %v1288_v29 = vpop.eup %1287  ;;  %879 = vadd.xlane.f32.xlu1 %v1286_v63 }
 0x28e   :  { %881 = vadd.xlane.f32.xlu0 %v1288_v29 }
 0x290   :  { %v1290_v19 = vpop.eup %1289 }
 0x291   :  { %883 = vadd.xlane.f32.xlu1 %v1290_v19 }
 0x2d8   :  { %v826_v31 = vpop.xlane.xlu0 %825 }
 0x2d9   :  { %1291 = vlog2.f32 %v826_v31 }
 0x2dc   :  { %v828_v1 = vpop.xlane.xlu1 %827  ;;  %v822_v36 = vpop.xlane.xlu0 %821 }
 0x2dd   :  { %1293 = vlog2.f32 %v828_v1 }
 0x2de   :  { %1295 = vlog2.f32 %v822_v36 }
 0x2e0   :  { %v824_v20 = vpop.xlane.xlu1 %823 }
 0x2e1   :  { %1297 = vlog2.f32 %v824_v20 }
 0x2e2   :  { %v834_v3 = vpop.xlane.xlu0 %833 }
 0x2e3   :  { %1299 = vlog2.f32 %v834_v3 }
 0x2e4   :  { %v836_v42 = vpop.xlane.xlu1 %835 }
 0x2e5   :  { %1301 = vlog2.f32 %v836_v42 }
 0x2e6   :  { %v1292_v44 = vpop.eup %1291  ;;  %v830_v5 = vpop.xlane.xlu0 %829 }
 0x2e7   :  { %v890_v25 = vmul.f32 0.6931472, %v1292_v44  ;;  %1303 = vlog2.f32 %v830_v5 }
 0x2e8   :  { %v832_v50 = vpop.xlane.xlu1 %831 }
 0x2e9   :  { %v951_v7 = vsub.f32 %v1652_v22, %v890_v25  ;;  %1305 = vlog2.f32 %v832_v50 }
 0x2ea   :  { %v1294_v54 = vpop.eup %1293  ;;  %v842_v56 = vpop.xlane.xlu0 %841 }
 0x2eb   :  { %v1296_v9 = vpop.eup %1295  ;;  %983 = vst [vmem:[%s1912_s5 + $0x10] sm:$0xff] %v951_v7  ;;  %v892_v60 = vmul.f32 0.6931472, %v1294_v54  ;;  %1307 = vlog2.f32 %v842_v56 }
 0x2ec   :  { %v886_v62 = vmul.f32 0.6931472, %v1296_v9  ;;  %v844_v55 = vpop.xlane.xlu1 %843 }
 0x2ed   :  { %v952_v2 = vsub.f32 %v1660_v33, %v892_v60  ;;  %1309 = vlog2.f32 %v844_v55 }
 0x2ee   :  { %v1298_v57 = vpop.eup %1297  ;;  %v949_v13 = vsub.f32 %v1656_v27, %v886_v62  ;;  %v838_v37 = vpop.xlane.xlu0 %837 }
 0x2ef   :  { %984 = vst [vmem:[%s1912_s5 + $0x18] sm:$0xff] %v952_v2  ;;  %v888_v22 = vmul.f32 0.6931472, %v1298_v57  ;;  %1311 = vlog2.f32 %v838_v37 }
 0x2f0   :  { %v1300_v8 = vpop.eup %1299  ;;  %981 = vst [vmem:[%s1912_s5] sm:$0xff] %v949_v13  ;;  %v840_v59 = vpop.xlane.xlu1 %839 }
 0x2f1   :  { %v950_v14 = vsub.f32 %v1664_v38, %v888_v22  ;;  %v898_v33 = vmul.f32 0.6931472, %v1300_v8  ;;  %1313 = vlog2.f32 %v840_v59 }
 0x2f2   :  { %v1302_v17 = vpop.eup %1301  ;;  %v850_v16 = vpop.xlane.xlu0 %849 }
 0x2f3   :  { %982 = vst [vmem:[%s1912_s5 + $0x8] sm:$0xff] %v950_v14  ;;  %v955_v27 = vsub.f32 %v1668_v34, %v898_v33  ;;  %v900_v61 = vmul.f32 0.6931472, %v1302_v17  ;;  %1315 = vlog2.f32 %v850_v16 }
 0x2f4   :  { %v1304_v21 = vpop.eup %1303  ;;  %v852_v24 = vpop.xlane.xlu1 %851 }
 0x2f5   :  { %987 = vst [vmem:[%s1912_s5 + $0x30] sm:$0xff] %v955_v27  ;;  %v956_v38 = vsub.f32 %v1672_v23, %v900_v61  ;;  %v894_v63 = vmul.f32 0.6931472, %v1304_v21  ;;  %1317 = vlog2.f32 %v852_v24 }
 0x2f6   :  { %v1306_v29 = vpop.eup %1305  ;;  %v846_v19 = vpop.xlane.xlu0 %845 }
 0x2f7   :  { %988 = vst [vmem:[%s1912_s5 + $0x38] sm:$0xff] %v956_v38  ;;  %v953_v34 = vsub.f32 %v1676_v48, %v894_v63  ;;  %v896_v31 = vmul.f32 0.6931472, %v1306_v29  ;;  %1319 = vlog2.f32 %v846_v19 }
 0x2f8   :  { %v1308_v1 = vpop.eup %1307  ;;  %v848_v36 = vpop.xlane.xlu1 %847 }
 0x2f9   :  { %985 = vst [vmem:[%s1912_s5 + $0x20] sm:$0xff] %v953_v34  ;;  %v954_v23 = vsub.f32 %v1680_v28, %v896_v31  ;;  %v906_v20 = vmul.f32 0.6931472, %v1308_v1  ;;  %1321 = vlog2.f32 %v848_v36 }
 0x2fa   :  { %v1310_v3 = vpop.eup %1309  ;;  %v858_v42 = vpop.xlane.xlu0 %857 }
 0x2fb   :  { %986 = vst [vmem:[%s1912_s5 + $0x28] sm:$0xff] %v954_v23  ;;  %v959_v48 = vsub.f32 %v1684_v58, %v906_v20  ;;  %v908_v44 = vmul.f32 0.6931472, %v1310_v3  ;;  %1323 = vlog2.f32 %v858_v42 }
 0x2fc   :  { %v1312_v5 = vpop.eup %1311  ;;  %v860_v25 = vpop.xlane.xlu1 %859 }
 0x2fd   :  { %991 = vst [vmem:[%s1912_s5 + $0x50] sm:$0xff] %v959_v48  ;;  %v960_v28 = vsub.f32 %v1688_v0, %v908_v44  ;;  %v902_v50 = vmul.f32 0.6931472, %v1312_v5  ;;  %1325 = vlog2.f32 %v860_v25 }
 0x2fe   :  { %v1314_v7 = vpop.eup %1313  ;;  %v854_v54 = vpop.xlane.xlu0 %853 }
 0x2ff   :  { %992 = vst [vmem:[%s1912_s5 + $0x58] sm:$0xff] %v960_v28  ;;  %v957_v58 = vsub.f32 %v1692_v6, %v902_v50  ;;  %v904_v56 = vmul.f32 0.6931472, %v1314_v7  ;;  %1327 = vlog2.f32 %v854_v54 }
 0x300   :  { %v1316_v9 = vpop.eup %1315  ;;  %v856_v60 = vpop.xlane.xlu1 %855 }
 0x301   :  { %989 = vst [vmem:[%s1912_s5 + $0x40] sm:$0xff] %v957_v58  ;;  %v958_v0 = vsub.f32 %v1696_v10, %v904_v56  ;;  %v914_v62 = vmul.f32 0.6931472, %v1316_v9  ;;  %1329 = vlog2.f32 %v856_v60 }
 0x302   :  { %v1318_v55 = vpop.eup %1317  ;;  %v866_v2 = vpop.xlane.xlu0 %865 }
 0x303   :  { %990 = vst [vmem:[%s1912_s5 + $0x48] sm:$0xff] %v958_v0  ;;  %v963_v6 = vsub.f32 %v1700_v15, %v914_v62  ;;  %v916_v57 = vmul.f32 0.6931472, %v1318_v55  ;;  %1331 = vlog2.f32 %v866_v2 }
 0x304   :  { %v1320_v13 = vpop.eup %1319  ;;  %v868_v37 = vpop.xlane.xlu1 %867 }
 0x305   :  { %995 = vst [vmem:[%s1912_s5 + $0x70] sm:$0xff] %v963_v6  ;;  %v964_v10 = vsub.f32 %v1704_v26, %v916_v57  ;;  %v910_v22 = vmul.f32 0.6931472, %v1320_v13  ;;  %1333 = vlog2.f32 %v868_v37 }
 0x306   :  { %v1322_v8 = vpop.eup %1321  ;;  %v862_v59 = vpop.xlane.xlu0 %861 }
 0x307   :  { %996 = vst [vmem:[%s1912_s5 + $0x78] sm:$0xff] %v964_v10  ;;  %v961_v15 = vsub.f32 %v1708_v18, %v910_v22  ;;  %v912_v14 = vmul.f32 0.6931472, %v1322_v8  ;;  %1335 = vlog2.f32 %v862_v59 }
 0x308   :  { %v1324_v33 = vpop.eup %1323  ;;  %v864_v17 = vpop.xlane.xlu1 %863 }
 0x309   :  { %993 = vst [vmem:[%s1912_s5 + $0x60] sm:$0xff] %v961_v15  ;;  %v962_v26 = vsub.f32 %v1712_v40, %v912_v14  ;;  %v922_v16 = vmul.f32 0.6931472, %v1324_v33  ;;  %1337 = vlog2.f32 %v864_v17 }
 0x30a   :  { %v1326_v27 = vpop.eup %1325  ;;  %v874_v61 = vpop.xlane.xlu0 %873 }
 0x30b   :  { %994 = vst [vmem:[%s1912_s5 + $0x68] sm:$0xff] %v962_v26  ;;  %v967_v18 = vsub.f32 %v1716_v46, %v922_v16  ;;  %v924_v21 = vmul.f32 0.6931472, %v1326_v27  ;;  %1339 = vlog2.f32 %v874_v61 }
 0x30c   :  { %v1328_v24 = vpop.eup %1327  ;;  %v876_v38 = vpop.xlane.xlu1 %875 }
 0x30d   :  { %999 = vst [vmem:[%s1912_s5 + $0x90] sm:$0xff] %v967_v18  ;;  %v968_v40 = vsub.f32 %v1720_v52, %v924_v21  ;;  %v918_v63 = vmul.f32 0.6931472, %v1328_v24  ;;  %1341 = vlog2.f32 %v876_v38 }
 0x30e   :  { %v1330_v29 = vpop.eup %1329  ;;  %v870_v19 = vpop.xlane.xlu0 %869 }
 0x30f   :  { %1000 = vst [vmem:[%s1912_s5 + $0x98] sm:$0xff] %v968_v40  ;;  %v965_v46 = vsub.f32 %v1724_v30, %v918_v63  ;;  %v920_v34 = vmul.f32 0.6931472, %v1330_v29  ;;  %1343 = vlog2.f32 %v870_v19 }
 0x310   :  { %v1332_v31 = vpop.eup %1331  ;;  %v872_v1 = vpop.xlane.xlu1 %871 }
 0x311   :  { %997 = vst [vmem:[%s1912_s5 + $0x80] sm:$0xff] %v965_v46  ;;  %v966_v52 = vsub.f32 %v1728_v32, %v920_v34  ;;  %v930_v36 = vmul.f32 0.6931472, %v1332_v31  ;;  %1345 = vlog2.f32 %v872_v1 }
 0x312   :  { %v1334_v23 = vpop.eup %1333  ;;  %v878_v20 = vpop.xlane.xlu0 %877 }
 0x313   :  { %998 = vst [vmem:[%s1912_s5 + $0x88] sm:$0xff] %v966_v52  ;;  %v971_v30 = vsub.f32 %v1732_v4, %v930_v36  ;;  %v932_v3 = vmul.f32 0.6931472, %v1334_v23  ;;  %1347 = vlog2.f32 %v878_v20 }
 0x314   :  { %v1336_v42 = vpop.eup %1335 }
 0x315   :  { %1003 = vst [vmem:[%s1912_s5 + $0xb0] sm:$0xff] %v971_v30  ;;  %v972_v48 = vsub.f32 %v1736_v12, %v932_v3  ;;  %v926_v32 = vmul.f32 0.6931472, %v1336_v42 }
 0x316   :  { %v1338_v44 = vpop.eup %1337  ;;  %v880_v5 = vpop.xlane.xlu1 %879 }
 0x317   :  { %1004 = vst [vmem:[%s1912_s5 + $0xb8] sm:$0xff] %v972_v48  ;;  %v969_v25 = vsub.f32 %v1740_v41, %v926_v32  ;;  %v928_v28 = vmul.f32 0.6931472, %v1338_v44  ;;  %1349 = vlog2.f32 %v880_v5  ;;  %v882_v4 = vpop.xlane.xlu0 %881 }
 0x318   :  { %v1340_v50 = vpop.eup %1339  ;;  %1351 = vlog2.f32 %v882_v4 }
 0x319   :  { %1001 = vst [vmem:[%s1912_s5 + $0xa0] sm:$0xff] %v969_v25  ;;  %v970_v12 = vsub.f32 %v1744_v43, %v928_v28  ;;  %v938_v7 = vmul.f32 0.6931472, %v1340_v50 }
 0x31a   :  { %v1342_v54 = vpop.eup %1341  ;;  %v884_v58 = vpop.xlane.xlu1 %883 }
 0x31b   :  { %1002 = vst [vmem:[%s1912_s5 + $0xa8] sm:$0xff] %v970_v12  ;;  %v975_v41 = vsub.f32 %v1748_v45, %v938_v7  ;;  %v940_v56 = vmul.f32 0.6931472, %v1342_v54  ;;  %1353 = vlog2.f32 %v884_v58 }
 0x31c   :  { %v1344_v9 = vpop.eup %1343 }
 0x31d   :  { %1007 = vst [vmem:[%s1912_s5 + $0xd0] sm:$0xff] %v975_v41  ;;  %v976_v60 = vsub.f32 %v1752_v47, %v940_v56  ;;  %v934_v0 = vmul.f32 0.6931472, %v1344_v9 }
 0x31e   :  { %v1346_v43 = vpop.eup %1345 }
 0x31f   :  { %1008 = vst [vmem:[%s1912_s5 + $0xd8] sm:$0xff] %v976_v60  ;;  %v973_v62 = vsub.f32 %v1756_v49, %v934_v0  ;;  %v936_v55 = vmul.f32 0.6931472, %v1346_v43 }
 0x320   :  { %v1348_v2 = vpop.eup %1347 }
 0x321   :  { %1005 = vst [vmem:[%s1912_s5 + $0xc0] sm:$0xff] %v973_v62  ;;  %v974_v45 = vsub.f32 %v1760_v51, %v936_v55  ;;  %v942_v6 = vmul.f32 0.6931472, %v1348_v2 }
 0x323   :  { %1006 = vst [vmem:[%s1912_s5 + $0xc8] sm:$0xff] %v974_v45  ;;  %v977_v47 = vsub.f32 %v1764_v53, %v942_v6 }
 0x324   :  { %v1350_v57 = vpop.eup %1349 }
 0x325   :  { %v1352_v13 = vpop.eup %1351  ;;  %1009 = vst [vmem:[%s1912_s5 + $0xe0] sm:$0xff] %v977_v47  ;;  %v944_v49 = vmul.f32 0.6931472, %v1350_v57 }
 0x326   :  { %v946_v37 = vmul.f32 0.6931472, %v1352_v13 }
 0x327   :  { %v978_v10 = vsub.f32 %v1768_v11, %v944_v49 }
 0x328   :  { %v1354_v22 = vpop.eup %1353  ;;  %v979_v51 = vsub.f32 %v1771_v35, %v946_v37 }
 0x329   :  { %1010 = vst [vmem:[%s1912_s5 + $0xe8] sm:$0xff] %v978_v10  ;;  %v948_v8 = vmul.f32 0.6931472, %v1354_v22 }
 0x32a   :  { %1011 = vst [vmem:[%s1912_s5 + $0xf0] sm:$0xff] %v979_v51 }
 0x32b   :  { %v980_v53 = vsub.f32 %v1776_v39, %v948_v8 }
 0x32d   :  { %1012 = vst [vmem:[%s1912_s5 + $0xf8] sm:$0xff] %v980_v53 }

</bundles_post_ra>
